<compile_context>
chip_gen: v7x
topology: tpu7x:2x2x1
jax: 0.10.0
libtpu: 0.0.40
codegen_flags: <defaults>
</compile_context>

<pallas_src>
import math
import re
from dataclasses import dataclass
from typing import Optional

import jax
import jax.numpy as jnp
from jax import lax
from jax.experimental import pallas as pl
from jax.experimental.pallas import tpu as pltpu

FSQ_LEVELS = (8, 8, 8, 5, 5, 5)   # Cosmos DV FSQ levels -> 64000 codes, D = 6
D = len(FSQ_LEVELS)
SPATIAL_COMP = 16                 # spatial_compression=16
TEMPORAL_COMP = 8                 # temporal_compression=8 (causal: T=1 -> T'=1)

# ---------------------------------------------------------------- FSQ consts -
# All FSQ constants are compile-time Python floats (closure constants); the
# kernels rebuild them as (1, D) rows via iota+select so no array constant or
# extra operand is needed.
_EPS = 1e-3
_LVL_F = tuple(float(l) for l in FSQ_LEVELS)
_HALF_L = tuple((l - 1.0) * (1.0 - _EPS) / 2.0 for l in _LVL_F)
_OFFSET = tuple(0.5 if int(l) % 2 == 0 else 0.0 for l in FSQ_LEVELS)
_SHIFT = tuple(math.atanh(o / h) for o, h in zip(_OFFSET, _HALF_L))
_HALF_W = tuple(float(int(l) // 2) for l in FSQ_LEVELS)
_INV_HALF_W = tuple(1.0 / w for w in _HALF_W)
_BASIS = []
_acc = 1.0
for _l in _LVL_F:
    _BASIS.append(_acc)
    _acc *= _l
_BASIS = tuple(_BASIS)
_INV_BASIS = tuple(1.0 / b for b in _BASIS)
_INV_LVL = tuple(1.0 / l for l in _LVL_F)
_N_CODES = 1
for _l in FSQ_LEVELS:
    _N_CODES *= _l
# Static guard: the decoder's floor(idx * 1/basis) / mod-by-reciprocal trick is
# exact only while prod(levels) is small enough that the f32 rounding of the
# reciprocal cannot cross an integer boundary (margin 0.5/basis).
assert _N_CODES < (1 << 21), "FSQ reciprocal floor/mod needs prod(levels) < 2^21"


def _assert_cosmos_model_type(model_path: str, expected_type: str) -> str:
    match = re.search("Cosmos-Tokenize1-(DV|CV|DI|CI)", model_path, re.IGNORECASE)
    if not match:
        raise ValueError(f"No valid model type found in model_path: {model_path}.")
    model_type = match.group(1)
    if model_type.upper() != expected_type.upper():
        raise ValueError(
            f"Model type mismatch: expected {expected_type!r}, found {model_type!r}.")
    return model_type


@dataclass
class LatentVideoVAEArgs:
    model_name: str = "COSMOS-DV"
    pretrained_model_name_or_path: str = "Cosmos-Tokenize1-DV8x16x16-720p"
    revision: Optional[str] = None
    variant: Optional[str] = None
    model_dtype: str = "bfloat16"
    enable_tiling: bool = True
    enable_slicing: bool = True


# ---------------------------------------------------------------- budgeting --

def _chip_budget():
    """Return (vmem_limit_bytes, token-tile cap) adapted to the TPU generation.

    v5e/v6e have 128 MiB physical VMEM -> 64 MiB scoped limit, tm<=4096.
    v7x (64 MiB physical) / unknown      -> 40 MiB scoped limit, tm<=2048.
    """
    vmem_phys = None
    try:
        info = pltpu.get_tpu_info()
        vmem_phys = getattr(info, "vmem_capacity_bytes", None)
    except Exception:
        vmem_phys = None
    if vmem_phys is not None and vmem_phys >= 128 * 1024 * 1024:
        return 64 * 1024 * 1024, 4096
    return 40 * 1024 * 1024, 2048


def _pick_tile(ntok: int, bytes_per_token: int, vmem_limit: int, tm_cap: int) -> int:
    """Largest token tile (multiple of 128) that fits the VMEM budget, capped
    per-chip, and reduced so the grid keeps >=~4 steps for pipelining."""
    budget = int(vmem_limit * 0.6)                      # leave pipelining headroom
    fit = budget // max(int(bytes_per_token), 1)
    tm = min(tm_cap, max(128, (fit // 128) * 128))
    steps_target = 4
    if ntok >= steps_target * 128:
        tm = min(tm, ((ntok + steps_target * 128 - 1) // (steps_target * 128)) * 128)
    tm = min(tm, ((ntok + 127) // 128) * 128)           # never exceed padded tokens
    return max(128, tm)


def _compiler_params(vmem_limit: int):
    return pltpu.CompilerParams(
        dimension_semantics=("parallel",),   # safe everywhere; see v7x TODO above
        vmem_limit_bytes=int(vmem_limit))


# ---------------------------------------------------------------- kernels ----

def _dim_rows(*value_tuples):
    """Build (1, D) f32 rows from Python-float tuples using only iota+select,
    so the kernel has no array constants (always lowers cleanly)."""
    d_idx = lax.broadcasted_iota(jnp.int32, (1, D), 1)
    rows = []
    for vals in value_tuples:
        row = jnp.full((1, D), float(vals[0]), jnp.float32)
        for i in range(1, D):
            row = jnp.where(d_idx == i, float(vals[i]), row)
        rows.append(row)
    return rows


def _enc_kernel(p_ref, we_ref, idx_ref, code_ref):
    shift, half_l, offset, half_w, inv_half_w, basis = _dim_rows(
        _SHIFT, _HALF_L, _OFFSET, _HALF_W, _INV_HALF_W, _BASIS)
    # Standard-orientation patch embedding on the MXU: (tm, K) @ (K, D).
    z = jnp.dot(p_ref[...], we_ref[...],
                preferred_element_type=jnp.float32)              # (tm, D)
    q = jnp.round(jnp.tanh(z + shift) * half_l - offset)         # half-to-even
    code_ref[...] = (q * inv_half_w).astype(code_ref.dtype)      # codes in [-1, 1]
    digits = q + half_w                                          # [0, L-1], exact f32
    idx = jnp.sum(digits * basis, axis=1, keepdims=True)         # (tm, 1), < 64000
    idx_ref[...] = idx.astype(jnp.int32)


def _dec_kernel(idx_ref, wd_ref, out_ref):
    half_w, inv_half_w, inv_basis, lvl, inv_lvl = _dim_rows(
        _HALF_W, _INV_HALF_W, _INV_BASIS, _LVL_F, _INV_LVL)
    # +0.5 margin makes floor(int * 1/b) exact despite the rounded reciprocal
    # (guarded by the module-level static assertion).
    idx_f = idx_ref[...].astype(jnp.float32) + 0.5               # (tm, 1)
    d = jnp.floor(idx_f * inv_basis)                             # (tm, D)
    digit = d - jnp.floor((d + 0.5) * inv_lvl) * lvl             # d mod L
    codes = (digit - half_w) * inv_half_w                        # [-1, 1] grid
    # codes are exact multiples of 0.25/0.5 for the current levels -> exact in bf16
    out_ref[...] = jnp.dot(codes.astype(wd_ref.dtype), wd_ref[...],
                           preferred_element_type=jnp.float32
                           ).astype(out_ref.dtype)               # (tm, K)


def _fwd_kernel(p_ref, we_ref, wd_ref, out_ref):
    # Fused encode->decode: quantized codes never leave registers/VMEM.
    shift, half_l, offset, inv_half_w = _dim_rows(
        _SHIFT, _HALF_L, _OFFSET, _INV_HALF_W)
    z = jnp.dot(p_ref[...], we_ref[...],
                preferred_element_type=jnp.float32)              # (tm, D)
    q = jnp.round(jnp.tanh(z + shift) * half_l - offset)
    codes = q * inv_half_w                                       # (tm, D)
    out_ref[...] = jnp.dot(codes.astype(wd_ref.dtype), wd_ref[...],
                           preferred_element_type=jnp.float32
                           ).astype(out_ref.dtype)               # (tm, K)


# --------------------------------------------------------------- wrappers ----

def _pad_tokens(a, ntok_pad, axis=0):
    ntok = a.shape[axis]
    if ntok_pad != ntok:
        pads = [(0, 0)] * a.ndim
        pads[axis] = (0, ntok_pad - ntok)
        a = jnp.pad(a, pads)
    return a


def _patchify(x):
    """x: (B, C, H, W) -> patches (Ntok, K), plus (B, Tp, Hp, Wp, C)."""
    B, C, H, W = x.shape
    assert H % SPATIAL_COMP == 0 and W % SPATIAL_COMP == 0
    Hp, Wp, Tp = H // SPATIAL_COMP, W // SPATIAL_COMP, 1
    K = C * SPATIAL_COMP * SPATIAL_COMP
    xp = x.reshape(B, C, Hp, SPATIAL_COMP, Wp, SPATIAL_COMP)
    xp = xp.transpose(0, 2, 4, 1, 3, 5).reshape(B * Tp * Hp * Wp, K)
    return xp, (B, Tp, Hp, Wp, C)


def _unpatchify(patches, dims):
    """patches (Ntok, K) -> image (B, C, H, W) (T'=1 squeezed like PyTorch)."""
    B, Tp, Hp, Wp, C = dims
    patches = patches.reshape(B, Tp, Hp, Wp, C, SPATIAL_COMP, SPATIAL_COMP)
    xv = patches.transpose(0, 4, 1, 2, 5, 3, 6).reshape(
        B, C, Tp, Hp * SPATIAL_COMP, Wp * SPATIAL_COMP)
    if xv.shape[2] == 1:                 # mirror the PyTorch squeeze(2)
        xv = xv[:, :, 0]
    return xv


def fsq_patch_encode(x, w_enc):
    """x: (B, C, H, W) -> (indices (B,T',H',W') int32, codes (B,D,T',H',W') f32)."""
    K, D_ = w_enc.shape
    xp, (B, Tp, Hp, Wp, _) = _patchify(x)
    ntok = xp.shape[0]
    vmem_limit, tm_cap = _chip_budget()
    bpt = 2 * 2 * K + 2 * (4 * D_ + 4)          # dbl-buffered in-tile + small outs
    tm = _pick_tile(ntok, bpt, vmem_limit, tm_cap)
    ntok_pad = pl.cdiv(ntok, tm) * tm
    xp = _pad_tokens(xp, ntok_pad).astype(w_enc.dtype)

    cost = pl.CostEstimate(
        flops=2 * ntok_pad * K * D_,
        transcendentals=ntok_pad * D_,
        bytes_accessed=ntok_pad * K * 2 + K * D_ * 2 + ntok_pad * (4 + D_ * 4))

    idx, codes = pl.pallas_call(
        _enc_kernel,
        out_shape=(jax.ShapeDtypeStruct((ntok_pad, 1), jnp.int32),
                   jax.ShapeDtypeStruct((ntok_pad, D_), jnp.float32)),
        grid=(ntok_pad // tm,),
        in_specs=[pl.BlockSpec((tm, K), lambda i: (i, 0)),
                  pl.BlockSpec((K, D_), lambda i: (0, 0))],   # resident weight
        out_specs=(pl.BlockSpec((tm, 1), lambda i: (i, 0)),
                   pl.BlockSpec((tm, D_), lambda i: (i, 0))),
        compiler_params=_compiler_params(vmem_limit),
        cost_estimate=cost,
    )(xp, w_enc)

    indices = idx[:ntok, 0].reshape(B, Tp, Hp, Wp)                       # BTHW
    codes = codes[:ntok].reshape(B, Tp, Hp, Wp, D_).transpose(0, 4, 1, 2, 3)
    return indices, codes


def fsq_patch_decode(indices, w_dec, C):
    """indices: (B, T', H', W') int32 -> reconstruction (B, C, H, W)."""
    B, Tp, Hp, Wp = indices.shape
    D_, K = w_dec.shape
    ntok = B * Tp * Hp * Wp
    vmem_limit, tm_cap = _chip_budget()
    bpt = 2 * 2 * K + 2 * 4                    # dbl-buffered out-tile + idx column
    tm = _pick_tile(ntok, bpt, vmem_limit, tm_cap)
    ntok_pad = pl.cdiv(ntok, tm) * tm
    idx = _pad_tokens(indices.reshape(ntok, 1).astype(jnp.int32), ntok_pad, axis=0)

    cost = pl.CostEstimate(
        flops=2 * ntok_pad * K * D_,
        transcendentals=0,
        bytes_accessed=ntok_pad * 4 + D_ * K * 2 + ntok_pad * K * 2)

    patches = pl.pallas_call(
        _dec_kernel,
        out_shape=jax.ShapeDtypeStruct((ntok_pad, K), w_dec.dtype),
        grid=(ntok_pad // tm,),
        in_specs=[pl.BlockSpec((tm, 1), lambda i: (i, 0)),
                  pl.BlockSpec((D_, K), lambda i: (0, 0))],   # resident weight
        out_specs=pl.BlockSpec((tm, K), lambda i: (i, 0)),
        compiler_params=_compiler_params(vmem_limit),
        cost_estimate=cost,
    )(idx, w_dec)

    return _unpatchify(patches[:ntok], (B, Tp, Hp, Wp, C))


def fsq_patch_forward(x, w_enc, w_dec):
    """Fused encode->decode: x (B,C,H,W) -> reconstruction (B,C,H,W)."""
    K, D_ = w_enc.shape
    xp, dims = _patchify(x)
    ntok = xp.shape[0]
    vmem_limit, tm_cap = _chip_budget()
    bpt = 2 * 2 * K * 2                        # dbl-buffered in + out tiles (bf16)
    tm = _pick_tile(ntok, bpt, vmem_limit, tm_cap)
    ntok_pad = pl.cdiv(ntok, tm) * tm
    xp = _pad_tokens(xp, ntok_pad).astype(w_enc.dtype)

    cost = pl.CostEstimate(
        flops=4 * ntok_pad * K * D_,
        transcendentals=ntok_pad * D_,
        bytes_accessed=2 * ntok_pad * K * 2 + 2 * D_ * K * 2)

    patches = pl.pallas_call(
        _fwd_kernel,
        out_shape=jax.ShapeDtypeStruct((ntok_pad, K), w_dec.dtype),
        grid=(ntok_pad // tm,),
        in_specs=[pl.BlockSpec((tm, K), lambda i: (i, 0)),
                  pl.BlockSpec((K, D_), lambda i: (0, 0)),
                  pl.BlockSpec((D_, K), lambda i: (0, 0))],
        out_specs=pl.BlockSpec((tm, K), lambda i: (i, 0)),
        compiler_params=_compiler_params(vmem_limit),
        cost_estimate=cost,
    )(xp, w_enc, w_dec)

    return _unpatchify(patches[:ntok], dims)


# ------------------------------------------------------------------ module ---

class COSMOSDiscreteVAE:
    def __init__(self, args: LatentVideoVAEArgs, in_channels: int = 3, seed: int = 0):
        _assert_cosmos_model_type(args.pretrained_model_name_or_path, "DV")
        self.cfg = args
        self.in_channels = in_channels
        self.dtype = jnp.bfloat16 if args.model_dtype == "bfloat16" else jnp.float32
        K = in_channels * 1 * SPATIAL_COMP * SPATIAL_COMP
        k1, k2 = jax.random.split(jax.random.PRNGKey(seed))
        # Deterministic synthetic encoder / decoder projections.
        # Encoder weight stored (K, D), decoder weight (D, K) — standard matmul
        # orientation (no in-kernel transpose of the big (tm, K) tile).
        self.w_enc = (jax.random.normal(k1, (K, D), jnp.float32) * 0.02).astype(self.dtype)
        self.w_dec = (jax.random.normal(k2, (D, K), jnp.float32) * 0.02).astype(self.dtype)

    def _to_nchw(self, frames_tensor):
        x = frames_tensor.astype(self.dtype)
        if x.ndim == 5 and x.shape[2] == 1:   # NCTHW with T=1 -> NCHW
            x = x[:, :, 0]
        return x

    def encode(self, frames_tensor):
        x = self._to_nchw(frames_tensor)
        return fsq_patch_encode(x, self.w_enc)   # (indices BTHW, codes B D T H W)

    def decode(self, indices):
        return fsq_patch_decode(indices, self.w_dec, self.in_channels)

    def forward(self, x):
        # Single fused kernel: no indices/codes HBM round trip, one launch.
        return fsq_patch_forward(self._to_nchw(x), self.w_enc, self.w_dec)

    __call__ = forward


if __name__ == "__main__":
    B, C, H, W = 2, 3, 32, 32
    key = jax.random.PRNGKey(0)
    x = jax.random.normal(key, (B, C, H, W), jnp.float32)

    vae = COSMOSDiscreteVAE(LatentVideoVAEArgs(), in_channels=C, seed=0)

    indices, codes = vae.encode(x)
    recon_fused = vae.forward(x)
    recon_split = vae.decode(indices)
    jax.block_until_ready((indices, codes, recon_fused, recon_split))

    Hp, Wp = H // SPATIAL_COMP, W // SPATIAL_COMP
    assert indices.shape == (B, 1, Hp, Wp)
    assert indices.dtype == jnp.int32
    assert codes.shape == (B, D, 1, Hp, Wp)
    assert recon_fused.shape == (B, C, H, W)
    assert recon_split.shape == (B, C, H, W)
    assert int(jnp.min(indices)) >= 0 and int(jnp.max(indices)) < _N_CODES

    # Fused forward must match encode->decode (same FSQ codes either way).
    diff = jnp.max(jnp.abs(recon_fused.astype(jnp.float32)
                           - recon_split.astype(jnp.float32)))
    assert float(diff) < 1e-2, float(diff)

    # Determinism / round-trip consistency of the quantizer.
    idx2, codes2 = vae.encode(x)
    jax.block_until_ready((idx2, codes2))
    assert bool(jnp.all(idx2 == indices))
    assert bool(jnp.all(codes2 == codes))

    print("KERNEL_OK")
</pallas_src>

<mosaic_0001>
module attributes {stable_mosaic.version = 11 : i64} {
  func.func @_enc_kernel(%arg0: i32, %arg1: memref<128x768xbf16, #tpu.memory_space<vmem>>, %arg2: memref<768x6xbf16, #tpu.memory_space<vmem>>, %arg3: memref<128x1xi32, #tpu.memory_space<vmem>>, %arg4: memref<128x6xf32, #tpu.memory_space<vmem>>) attributes {dimension_semantics = [#tpu.dimension_semantics<parallel>], iteration_bounds = array<i64: 1>, scalar_prefetch = 0 : i64, scratch_operands = 0 : i64, tpu.core_type = #tpu.core_type<tc>, window_params = [{transform_indices = @transform_0, window_bounds = array<i64: 128, 768>}, {pipeline_mode = #tpu.pipeline_mode<synchronous>, transform_indices = @transform_1, window_bounds = array<i64: 768, 6>}, {transform_indices = @transform_2, window_bounds = array<i64: 128, 1>}, {transform_indices = @transform_3, window_bounds = array<i64: 128, 6>}]} {
    %0 = tpu.iota {dimensions = array<i32: 1>} : vector<1x6xi32>
    %cst = arith.constant 0.143987015 : f32
    %1 = vector.broadcast %cst : f32 to vector<1x6xf32>
    %c1_i32 = arith.constant 1 : i32
    %2 = vector.broadcast %c1_i32 : i32 to vector<1x6xi32>
    %3 = arith.cmpi eq, %0, %2 : vector<1x6xi32>
    %cst_0 = arith.constant 0.143987015 : f32
    %4 = vector.broadcast %cst_0 : f32 to vector<1x6xf32>
    %5 = arith.select %3, %4, %1 : vector<1x6xi1>, vector<1x6xf32>
    %c2_i32 = arith.constant 2 : i32
    %6 = vector.broadcast %c2_i32 : i32 to vector<1x6xi32>
    %7 = arith.cmpi eq, %0, %6 : vector<1x6xi32>
    %cst_1 = arith.constant 0.143987015 : f32
    %8 = vector.broadcast %cst_1 : f32 to vector<1x6xf32>
    %9 = arith.select %7, %8, %5 : vector<1x6xi1>, vector<1x6xf32>
    %c3_i32 = arith.constant 3 : i32
    %10 = vector.broadcast %c3_i32 : i32 to vector<1x6xi32>
    %11 = arith.cmpi eq, %0, %10 : vector<1x6xi32>
    %cst_2 = arith.constant 0.000000e+00 : f32
    %12 = vector.broadcast %cst_2 : f32 to vector<1x6xf32>
    %13 = arith.select %11, %12, %9 : vector<1x6xi1>, vector<1x6xf32>
    %c4_i32 = arith.constant 4 : i32
    %14 = vector.broadcast %c4_i32 : i32 to vector<1x6xi32>
    %15 = arith.cmpi eq, %0, %14 : vector<1x6xi32>
    %cst_3 = arith.constant 0.000000e+00 : f32
    %16 = vector.broadcast %cst_3 : f32 to vector<1x6xf32>
    %17 = arith.select %15, %16, %13 : vector<1x6xi1>, vector<1x6xf32>
    %c5_i32 = arith.constant 5 : i32
    %18 = vector.broadcast %c5_i32 : i32 to vector<1x6xi32>
    %19 = arith.cmpi eq, %0, %18 : vector<1x6xi32>
    %cst_4 = arith.constant 0.000000e+00 : f32
    %20 = vector.broadcast %cst_4 : f32 to vector<1x6xf32>
    %21 = arith.select %19, %20, %17 : vector<1x6xi1>, vector<1x6xf32>
    %cst_5 = arith.constant 3.496500e+00 : f32
    %22 = vector.broadcast %cst_5 : f32 to vector<1x6xf32>
    %c1_i32_6 = arith.constant 1 : i32
    %23 = vector.broadcast %c1_i32_6 : i32 to vector<1x6xi32>
    %24 = arith.cmpi eq, %0, %23 : vector<1x6xi32>
    %cst_7 = arith.constant 3.496500e+00 : f32
    %25 = vector.broadcast %cst_7 : f32 to vector<1x6xf32>
    %26 = arith.select %24, %25, %22 : vector<1x6xi1>, vector<1x6xf32>
    %c2_i32_8 = arith.constant 2 : i32
    %27 = vector.broadcast %c2_i32_8 : i32 to vector<1x6xi32>
    %28 = arith.cmpi eq, %0, %27 : vector<1x6xi32>
    %cst_9 = arith.constant 3.496500e+00 : f32
    %29 = vector.broadcast %cst_9 : f32 to vector<1x6xf32>
    %30 = arith.select %28, %29, %26 : vector<1x6xi1>, vector<1x6xf32>
    %c3_i32_10 = arith.constant 3 : i32
    %31 = vector.broadcast %c3_i32_10 : i32 to vector<1x6xi32>
    %32 = arith.cmpi eq, %0, %31 : vector<1x6xi32>
    %cst_11 = arith.constant 1.998000e+00 : f32
    %33 = vector.broadcast %cst_11 : f32 to vector<1x6xf32>
    %34 = arith.select %32, %33, %30 : vector<1x6xi1>, vector<1x6xf32>
    %c4_i32_12 = arith.constant 4 : i32
    %35 = vector.broadcast %c4_i32_12 : i32 to vector<1x6xi32>
    %36 = arith.cmpi eq, %0, %35 : vector<1x6xi32>
    %cst_13 = arith.constant 1.998000e+00 : f32
    %37 = vector.broadcast %cst_13 : f32 to vector<1x6xf32>
    %38 = arith.select %36, %37, %34 : vector<1x6xi1>, vector<1x6xf32>
    %c5_i32_14 = arith.constant 5 : i32
    %39 = vector.broadcast %c5_i32_14 : i32 to vector<1x6xi32>
    %40 = arith.cmpi eq, %0, %39 : vector<1x6xi32>
    %cst_15 = arith.constant 1.998000e+00 : f32
    %41 = vector.broadcast %cst_15 : f32 to vector<1x6xf32>
    %42 = arith.select %40, %41, %38 : vector<1x6xi1>, vector<1x6xf32>
    %cst_16 = arith.constant 5.000000e-01 : f32
    %43 = vector.broadcast %cst_16 : f32 to vector<1x6xf32>
    %c1_i32_17 = arith.constant 1 : i32
    %44 = vector.broadcast %c1_i32_17 : i32 to vector<1x6xi32>
    %45 = arith.cmpi eq, %0, %44 : vector<1x6xi32>
    %cst_18 = arith.constant 5.000000e-01 : f32
    %46 = vector.broadcast %cst_18 : f32 to vector<1x6xf32>
    %47 = arith.select %45, %46, %43 : vector<1x6xi1>, vector<1x6xf32>
    %c2_i32_19 = arith.constant 2 : i32
    %48 = vector.broadcast %c2_i32_19 : i32 to vector<1x6xi32>
    %49 = arith.cmpi eq, %0, %48 : vector<1x6xi32>
    %cst_20 = arith.constant 5.000000e-01 : f32
    %50 = vector.broadcast %cst_20 : f32 to vector<1x6xf32>
    %51 = arith.select %49, %50, %47 : vector<1x6xi1>, vector<1x6xf32>
    %c3_i32_21 = arith.constant 3 : i32
    %52 = vector.broadcast %c3_i32_21 : i32 to vector<1x6xi32>
    %53 = arith.cmpi eq, %0, %52 : vector<1x6xi32>
    %cst_22 = arith.constant 0.000000e+00 : f32
    %54 = vector.broadcast %cst_22 : f32 to vector<1x6xf32>
    %55 = arith.select %53, %54, %51 : vector<1x6xi1>, vector<1x6xf32>
    %c4_i32_23 = arith.constant 4 : i32
    %56 = vector.broadcast %c4_i32_23 : i32 to vector<1x6xi32>
    %57 = arith.cmpi eq, %0, %56 : vector<1x6xi32>
    %cst_24 = arith.constant 0.000000e+00 : f32
    %58 = vector.broadcast %cst_24 : f32 to vector<1x6xf32>
    %59 = arith.select %57, %58, %55 : vector<1x6xi1>, vector<1x6xf32>
    %c5_i32_25 = arith.constant 5 : i32
    %60 = vector.broadcast %c5_i32_25 : i32 to vector<1x6xi32>
    %61 = arith.cmpi eq, %0, %60 : vector<1x6xi32>
    %cst_26 = arith.constant 0.000000e+00 : f32
    %62 = vector.broadcast %cst_26 : f32 to vector<1x6xf32>
    %63 = arith.select %61, %62, %59 : vector<1x6xi1>, vector<1x6xf32>
    %cst_27 = arith.constant 4.000000e+00 : f32
    %64 = vector.broadcast %cst_27 : f32 to vector<1x6xf32>
    %c1_i32_28 = arith.constant 1 : i32
    %65 = vector.broadcast %c1_i32_28 : i32 to vector<1x6xi32>
    %66 = arith.cmpi eq, %0, %65 : vector<1x6xi32>
    %cst_29 = arith.constant 4.000000e+00 : f32
    %67 = vector.broadcast %cst_29 : f32 to vector<1x6xf32>
    %68 = arith.select %66, %67, %64 : vector<1x6xi1>, vector<1x6xf32>
    %c2_i32_30 = arith.constant 2 : i32
    %69 = vector.broadcast %c2_i32_30 : i32 to vector<1x6xi32>
    %70 = arith.cmpi eq, %0, %69 : vector<1x6xi32>
    %cst_31 = arith.constant 4.000000e+00 : f32
    %71 = vector.broadcast %cst_31 : f32 to vector<1x6xf32>
    %72 = arith.select %70, %71, %68 : vector<1x6xi1>, vector<1x6xf32>
    %c3_i32_32 = arith.constant 3 : i32
    %73 = vector.broadcast %c3_i32_32 : i32 to vector<1x6xi32>
    %74 = arith.cmpi eq, %0, %73 : vector<1x6xi32>
    %cst_33 = arith.constant 2.000000e+00 : f32
    %75 = vector.broadcast %cst_33 : f32 to vector<1x6xf32>
    %76 = arith.select %74, %75, %72 : vector<1x6xi1>, vector<1x6xf32>
    %c4_i32_34 = arith.constant 4 : i32
    %77 = vector.broadcast %c4_i32_34 : i32 to vector<1x6xi32>
    %78 = arith.cmpi eq, %0, %77 : vector<1x6xi32>
    %cst_35 = arith.constant 2.000000e+00 : f32
    %79 = vector.broadcast %cst_35 : f32 to vector<1x6xf32>
    %80 = arith.select %78, %79, %76 : vector<1x6xi1>, vector<1x6xf32>
    %c5_i32_36 = arith.constant 5 : i32
    %81 = vector.broadcast %c5_i32_36 : i32 to vector<1x6xi32>
    %82 = arith.cmpi eq, %0, %81 : vector<1x6xi32>
    %cst_37 = arith.constant 2.000000e+00 : f32
    %83 = vector.broadcast %cst_37 : f32 to vector<1x6xf32>
    %84 = arith.select %82, %83, %80 : vector<1x6xi1>, vector<1x6xf32>
    %cst_38 = arith.constant 2.500000e-01 : f32
    %85 = vector.broadcast %cst_38 : f32 to vector<1x6xf32>
    %c1_i32_39 = arith.constant 1 : i32
    %86 = vector.broadcast %c1_i32_39 : i32 to vector<1x6xi32>
    %87 = arith.cmpi eq, %0, %86 : vector<1x6xi32>
    %cst_40 = arith.constant 2.500000e-01 : f32
    %88 = vector.broadcast %cst_40 : f32 to vector<1x6xf32>
    %89 = arith.select %87, %88, %85 : vector<1x6xi1>, vector<1x6xf32>
    %c2_i32_41 = arith.constant 2 : i32
    %90 = vector.broadcast %c2_i32_41 : i32 to vector<1x6xi32>
    %91 = arith.cmpi eq, %0, %90 : vector<1x6xi32>
    %cst_42 = arith.constant 2.500000e-01 : f32
    %92 = vector.broadcast %cst_42 : f32 to vector<1x6xf32>
    %93 = arith.select %91, %92, %89 : vector<1x6xi1>, vector<1x6xf32>
    %c3_i32_43 = arith.constant 3 : i32
    %94 = vector.broadcast %c3_i32_43 : i32 to vector<1x6xi32>
    %95 = arith.cmpi eq, %0, %94 : vector<1x6xi32>
    %cst_44 = arith.constant 5.000000e-01 : f32
    %96 = vector.broadcast %cst_44 : f32 to vector<1x6xf32>
    %97 = arith.select %95, %96, %93 : vector<1x6xi1>, vector<1x6xf32>
    %c4_i32_45 = arith.constant 4 : i32
    %98 = vector.broadcast %c4_i32_45 : i32 to vector<1x6xi32>
    %99 = arith.cmpi eq, %0, %98 : vector<1x6xi32>
    %cst_46 = arith.constant 5.000000e-01 : f32
    %100 = vector.broadcast %cst_46 : f32 to vector<1x6xf32>
    %101 = arith.select %99, %100, %97 : vector<1x6xi1>, vector<1x6xf32>
    %c5_i32_47 = arith.constant 5 : i32
    %102 = vector.broadcast %c5_i32_47 : i32 to vector<1x6xi32>
    %103 = arith.cmpi eq, %0, %102 : vector<1x6xi32>
    %cst_48 = arith.constant 5.000000e-01 : f32
    %104 = vector.broadcast %cst_48 : f32 to vector<1x6xf32>
    %105 = arith.select %103, %104, %101 : vector<1x6xi1>, vector<1x6xf32>
    %cst_49 = arith.constant 1.000000e+00 : f32
    %106 = vector.broadcast %cst_49 : f32 to vector<1x6xf32>
    %c1_i32_50 = arith.constant 1 : i32
    %107 = vector.broadcast %c1_i32_50 : i32 to vector<1x6xi32>
    %108 = arith.cmpi eq, %0, %107 : vector<1x6xi32>
    %cst_51 = arith.constant 8.000000e+00 : f32
    %109 = vector.broadcast %cst_51 : f32 to vector<1x6xf32>
    %110 = arith.select %108, %109, %106 : vector<1x6xi1>, vector<1x6xf32>
    %c2_i32_52 = arith.constant 2 : i32
    %111 = vector.broadcast %c2_i32_52 : i32 to vector<1x6xi32>
    %112 = arith.cmpi eq, %0, %111 : vector<1x6xi32>
    %cst_53 = arith.constant 6.400000e+01 : f32
    %113 = vector.broadcast %cst_53 : f32 to vector<1x6xf32>
    %114 = arith.select %112, %113, %110 : vector<1x6xi1>, vector<1x6xf32>
    %c3_i32_54 = arith.constant 3 : i32
    %115 = vector.broadcast %c3_i32_54 : i32 to vector<1x6xi32>
    %116 = arith.cmpi eq, %0, %115 : vector<1x6xi32>
    %cst_55 = arith.constant 5.120000e+02 : f32
    %117 = vector.broadcast %cst_55 : f32 to vector<1x6xf32>
    %118 = arith.select %116, %117, %114 : vector<1x6xi1>, vector<1x6xf32>
    %c4_i32_56 = arith.constant 4 : i32
    %119 = vector.broadcast %c4_i32_56 : i32 to vector<1x6xi32>
    %120 = arith.cmpi eq, %0, %119 : vector<1x6xi32>
    %cst_57 = arith.constant 2.560000e+03 : f32
    %121 = vector.broadcast %cst_57 : f32 to vector<1x6xf32>
    %122 = arith.select %120, %121, %118 : vector<1x6xi1>, vector<1x6xf32>
    %c5_i32_58 = arith.constant 5 : i32
    %123 = vector.broadcast %c5_i32_58 : i32 to vector<1x6xi32>
    %124 = arith.cmpi eq, %0, %123 : vector<1x6xi32>
    %cst_59 = arith.constant 1.280000e+04 : f32
    %125 = vector.broadcast %cst_59 : f32 to vector<1x6xf32>
    %126 = arith.select %124, %125, %122 : vector<1x6xi1>, vector<1x6xf32>
    %c0 = arith.constant 0 : index
    %c0_60 = arith.constant 0 : index
    %127 = vector.load %arg1[%c0, %c0_60] : memref<128x768xbf16, #tpu.memory_space<vmem>>, vector<128x768xbf16>
    %c0_61 = arith.constant 0 : index
    %c0_62 = arith.constant 0 : index
    %128 = vector.load %arg2[%c0_61, %c0_62] : memref<768x6xbf16, #tpu.memory_space<vmem>>, vector<768x6xbf16>
    %cst_63 = arith.constant dense<0.000000e+00> : vector<128x6xf32>
    %129 = tpu.matmul %127, %128, %cst_63 {dimension_numbers = #tpu.dot_dimension_numbers<[1], [0], [0], [1], [0, 0, 1, 1], [], []>} : vector<128x768xbf16>, vector<768x6xbf16>, vector<128x6xf32> -> vector<128x6xf32>
    %130 = vector.broadcast %21 : vector<1x6xf32> to vector<128x6xf32>
    %131 = arith.addf %129, %130 : vector<128x6xf32>
    %132 = math.tanh %131 : vector<128x6xf32>
    %133 = vector.broadcast %42 : vector<1x6xf32> to vector<128x6xf32>
    %134 = arith.mulf %132, %133 : vector<128x6xf32>
    %135 = vector.broadcast %63 : vector<1x6xf32> to vector<128x6xf32>
    %136 = arith.subf %134, %135 : vector<128x6xf32>
    %137 = math.roundeven %136 : vector<128x6xf32>
    %138 = vector.broadcast %105 : vector<1x6xf32> to vector<128x6xf32>
    %139 = arith.mulf %137, %138 : vector<128x6xf32>
    %c0_64 = arith.constant 0 : index
    %c0_65 = arith.constant 0 : index
    %140 = vector.load %arg4[%c0_64, %c0_65] : memref<128x6xf32, #tpu.memory_space<vmem>>, vector<128x6xf32>
    tpu.vector_store %arg4[%c0_64, %c0_65], %139 {strides = array<i32>} : memref<128x6xf32, #tpu.memory_space<vmem>>, vector<128x6xf32>,
    %141 = vector.broadcast %84 : vector<1x6xf32> to vector<128x6xf32>
    %142 = arith.addf %137, %141 : vector<128x6xf32>
    %143 = vector.broadcast %126 : vector<1x6xf32> to vector<128x6xf32>
    %144 = arith.mulf %142, %143 : vector<128x6xf32>
    %cst_66 = arith.constant dense<0.000000e+00> : vector<128xf32>
    %145 = vector.multi_reduction <add>, %144, %cst_66 [1] : vector<128x6xf32> to vector<128xf32>
    %146 = vector.shape_cast %145 : vector<128xf32> to vector<128x1xf32>
    %147 = arith.fptosi %146 : vector<128x1xf32> to vector<128x1xi32>
    %c0_67 = arith.constant 0 : index
    %c0_68 = arith.constant 0 : index
    %148 = vector.load %arg3[%c0_67, %c0_68] : memref<128x1xi32, #tpu.memory_space<vmem>>, vector<128x1xi32>
    tpu.vector_store %arg3[%c0_67, %c0_68], %147 {strides = array<i32>} : memref<128x1xi32, #tpu.memory_space<vmem>>, vector<128x1xi32>,
    return
  }
  func.func @transform_0(%arg0: i32) -> (i32, i32) {
    %c0_i32 = arith.constant 0 : i32
    %c0_i32_0 = arith.constant 0 : i32
    return %arg0, %c0_i32 : i32, i32
  }
  func.func @transform_1(%arg0: i32) -> (i32, i32) {
    %c0_i32 = arith.constant 0 : i32
    %c0_i32_0 = arith.constant 0 : i32
    %c0_i32_1 = arith.constant 0 : i32
    return %c0_i32, %c0_i32_0 : i32, i32
  }
  func.func @transform_2(%arg0: i32) -> (i32, i32) {
    %c0_i32 = arith.constant 0 : i32
    %c0_i32_0 = arith.constant 0 : i32
    return %arg0, %c0_i32 : i32, i32
  }
  func.func @transform_3(%arg0: i32) -> (i32, i32) {
    %c0_i32 = arith.constant 0 : i32
    %c0_i32_0 = arith.constant 0 : i32
    return %arg0, %c0_i32 : i32, i32
  }
}

</mosaic_0001>

<bundles_post_ra>
// kernel: tpu_custom_call.1
= control target key start
LH: loop header
LB: loop body
LE: loop exit
PB: predicated region body
PF: predicated region fallthrough
CT: control target
= control target key end

     0   :  { %vm1084_vm5 = vcmask 48128   ;;  %vm1197_vm6 = vcmask 7168   ;;  %s2383_s1 = inlined_call_operand.vmem [shape: bf16[768,6], index: 1, kind: input, shape index: {}]   ;;  %s2384_s0 = inlined_call_operand.vmem [shape: bf16[128,768], index: 0, kind: input, shape index: {}]   ;;  %s2385_s3 = inlined_call_operand.vmem [shape: f32[128,6], index: 3, kind: output, shape index: {1}]   ;;  %s2386_s2 = inlined_call_operand.vmem [shape: s32[128,1], index: 2, kind: output, shape index: {0}]  }
   0x1   :  { %v1580_v0 = vld [vmem:[%s2383_s1 + $0x40] sm:$0xff]   ;;  %v1582_v2 = vld [vmem:[%s2383_s1 + $0x48] sm:$0xff]   ;;  %v1584_v4 = vld [vmem:[%s2383_s1 + $0x50] sm:$0xff]  }
   0x2   :  { %v1581_v1 = vld [vmem:[%s2383_s1] sm:$0xff]   ;;  %1318 = vmatprep.subr.bf16.mxu0 %v1580_v0  ;;  %1510 = vmatprep.subr.bf16.mxu1 %v1580_v0  ;;  %v1583_v3 = vld [vmem:[%s2383_s1 + $0x8] sm:$0xff]   ;;  %v1585_v5 = vld [vmem:[%s2383_s1 + $0x10] sm:$0xff]  }
   0x3   :  { %1319 = vmatpush3.bf16.msra.mxu0 %v1581_v1  ;;  %1518 = vmatpush3.bf16.msra.mxu1 %v1581_v1  ;;  %v1586_v6 = vld [vmem:[%s2383_s1 + $0x58] sm:$0xff]   ;;  %v1588_v8 = vld [vmem:[%s2383_s1 + $0x60] sm:$0xff]   ;;  %v1590_v10 = vld [vmem:[%s2383_s1 + $0x68] sm:$0xff]  }
   0x4   :  { %1320 = vmatprep.subr.bf16.mxu0 %v1582_v2  ;;  %1511 = vmatprep.subr.bf16.mxu1 %v1582_v2  ;;  %v1587_v7 = vld [vmem:[%s2383_s1 + $0x18] sm:$0xff]   ;;  %v1589_v9 = vld [vmem:[%s2383_s1 + $0x20] sm:$0xff]   ;;  %v1591_v13 = vld [vmem:[%s2383_s1 + $0x28] sm:$0xff]  }
   0x5   :  { %v1598_v11 = vld [vmem:[%s2384_s0 + $0x4] ss:$24 sps:$4 sm:$0xff]   ;;  %v1592_v14 = vld [vmem:[%s2383_s1 + $0x70] sm:$0xff]   ;;  %v1596_v18 = vld [vmem:[%s2384_s0] ss:$24 sps:$4 sm:$0xff]  }
   0x6   :  { %v1601_v12 = vld [vmem:[%s2384_s0 + $0xc4] ss:$24 sps:$4 sm:$0xff]   ;;  %745 = vmatprep.mubr.bf16.mxu0 %v1598_v11  ;;  %v1593_v15 = vld [vmem:[%s2383_s1 + $0x30] sm:$0xff]   ;;  %v1599_v19 = vld [vmem:[%s2384_s0 + $0xc0] ss:$24 sps:$4 sm:$0xff]  }
   0x7   :  { %1321 = vmatpush3.bf16.msra.mxu0 %v1583_v3  ;;  %1519 = vmatpush3.bf16.msra.mxu1 %v1583_v3  ;;  %v1594_v16 = vld [vmem:[%s2383_s1 + $0x78] sm:$0xff]   ;;  %v1602_v20 = vld [vmem:[%s2383_s1 + $0xc0] sm:$0xff]   ;;  %v1606_v24 = vld [vmem:[%s2383_s1 + $0xc8] sm:$0xff]  }
   0x8   :  { %1322 = vmatprep.subr.bf16.mxu0 %v1584_v4  ;;  %1512 = vmatprep.subr.bf16.mxu1 %v1584_v4  ;;  %v1595_v17 = vld [vmem:[%s2383_s1 + $0x38] sm:$0xff]   ;;  %v1603_v21 = vld [vmem:[%s2383_s1 + $0x140] sm:$0xff]   ;;  %v1607_v25 = vld [vmem:[%s2383_s1 + $0x148] sm:$0xff]  }
   0x9   :  { %777 = vmatprep.mubr.bf16.mxu1 %v1601_v12  ;;  %v1604_v22 = vld [vmem:[%s2383_s1 + $0x80] sm:$0xff]   ;;  %v1610_v26 = vld [vmem:[%s2384_s0 + $0x34] ss:$24 sps:$4 sm:$0xff]   ;;  %v1614_v31 = vld [vmem:[%s2384_s0 + $0x30] ss:$24 sps:$4 sm:$0xff]  }
   0xa   :  { %v1605_v23 = vld [vmem:[%s2383_s1 + $0x100] sm:$0xff]   ;;  %v1608_v27 = vld [vmem:[%s2383_s1 + $0x88] sm:$0xff]   ;;  %v1616_v30 = vld [vmem:[%s2383_s1 + $0xd0] sm:$0xff]  }
   0xb   :  { %1323 = vmatpush3.bf16.msra.mxu0 %v1585_v5  ;;  %1520 = vmatpush3.bf16.msra.mxu1 %v1585_v5  ;;  %v1612_v28 = vld [vmem:[%s2384_s0 + $0xf4] ss:$24 sps:$4 sm:$0xff]   ;;  %v1615_v33 = vld [vmem:[%s2384_s0 + $0xf0] ss:$24 sps:$4 sm:$0xff]   ;;  %v1620_v36 = vld [vmem:[%s2383_s1 + $0xd8] sm:$0xff]  }
   0xc   :  { %1324 = vmatprep.subr.bf16.mxu0 %v1586_v6  ;;  %1513 = vmatprep.subr.bf16.mxu1 %v1586_v6  ;;  %v1609_v29 = vld [vmem:[%s2383_s1 + $0x108] sm:$0xff]   ;;  %v1617_v32 = vld [vmem:[%s2383_s1 + $0x150] sm:$0xff]   ;;  %v1621_v37 = vld [vmem:[%s2383_s1 + $0x158] sm:$0xff]  }
   0xd   :  { %v1618_v34 = vld [vmem:[%s2383_s1 + $0x90] sm:$0xff]   ;;  %v1624_v38 = vld [vmem:[%s2384_s0 + $0x64] ss:$24 sps:$4 sm:$0xff]   ;;  %v1628_v43 = vld [vmem:[%s2384_s0 + $0x60] ss:$24 sps:$4 sm:$0xff]  }
   0xe   :  { %v1619_v35 = vld [vmem:[%s2383_s1 + $0x110] sm:$0xff]   ;;  %v1622_v39 = vld [vmem:[%s2383_s1 + $0x98] sm:$0xff]   ;;  %v1630_v42 = vld [vmem:[%s2383_s1 + $0xe0] sm:$0xff]  }
   0xf   :  { %1325 = vmatpush3.bf16.msra.mxu0 %v1587_v7  ;;  %1521 = vmatpush3.bf16.msra.mxu1 %v1587_v7  ;;  %v1626_v40 = vld [vmem:[%s2384_s0 + $0x124] ss:$24 sps:$4 sm:$0xff]   ;;  %v1629_v44 = vld [vmem:[%s2384_s0 + $0x120] ss:$24 sps:$4 sm:$0xff]   ;;  %v1634_v48 = vld [vmem:[%s2383_s1 + $0xe8] sm:$0xff]  }
  0x10   :  { %1326 = vmatprep.subr.bf16.mxu0 %v1588_v8  ;;  %1514 = vmatprep.subr.bf16.mxu1 %v1588_v8  ;;  %v1623_v41 = vld [vmem:[%s2383_s1 + $0x118] sm:$0xff]   ;;  %v1631_v45 = vld [vmem:[%s2383_s1 + $0x160] sm:$0xff]   ;;  %v1635_v49 = vld [vmem:[%s2383_s1 + $0x168] sm:$0xff]  }
  0x11   :  { %v1632_v46 = vld [vmem:[%s2383_s1 + $0xa0] sm:$0xff]   ;;  %v1638_v50 = vld [vmem:[%s2384_s0 + $0x94] ss:$24 sps:$4 sm:$0xff]   ;;  %v1642_v55 = vld [vmem:[%s2384_s0 + $0x90] ss:$24 sps:$4 sm:$0xff]  }
  0x12   :  { %v1633_v47 = vld [vmem:[%s2383_s1 + $0x120] sm:$0xff]   ;;  %v1640_v51 = vld [vmem:[%s2384_s0 + $0x154] ss:$24 sps:$4 sm:$0xff]   ;;  %v1643_v56 = vld [vmem:[%s2384_s0 + $0x150] ss:$24 sps:$4 sm:$0xff]  }
  0x13   :  { %1327 = vmatpush3.bf16.msra.mxu0 %v1589_v9  ;;  %1522 = vmatpush3.bf16.msra.mxu1 %v1589_v9  ;;  %v1636_v52 = vld [vmem:[%s2383_s1 + $0xa8] sm:$0xff]   ;;  %v1644_v54 = vld [vmem:[%s2383_s1 + $0xf0] sm:$0xff]   ;;  %v1648_v60 = vld [vmem:[%s2383_s1 + $0xf8] sm:$0xff]  }
  0x14   :  { %1328 = vmatprep.subr.bf16.mxu0 %v1590_v10  ;;  %1515 = vmatprep.subr.bf16.mxu1 %v1590_v10  ;;  %v1637_v53 = vld [vmem:[%s2383_s1 + $0x128] sm:$0xff]   ;;  %v1645_v57 = vld [vmem:[%s2383_s1 + $0x170] sm:$0xff]   ;;  %v1649_v61 = vld [vmem:[%s2383_s1 + $0x178] sm:$0xff]  }
  0x15   :  { %v1646_v58 = vld [vmem:[%s2383_s1 + $0xb0] sm:$0xff]   ;;  %v1650_v62 = vld [vmem:[%s2383_s1 + $0xb8] sm:$0xff]   ;;  %v1654_v0 = vld [vmem:[%s2384_s0 + $0xc] ss:$24 sps:$4 sm:$0xff]  }
  0x16   :  { %v1647_v59 = vld [vmem:[%s2383_s1 + $0x130] sm:$0xff]   ;;  %v1651_v63 = vld [vmem:[%s2383_s1 + $0x138] sm:$0xff]   ;;  %v1652_v1 = vld [vmem:[%s2384_s0 + $0x8] ss:$24 sps:$4 sm:$0xff]  }
  0x17   :  { %1329 = vmatpush3.bf16.msra.mxu0 %v1591_v13  ;;  %1523 = vmatpush3.bf16.msra.mxu1 %v1591_v13  ;;  %v1657_v2 = vld [vmem:[%s2384_s0 + $0x14] ss:$24 sps:$4 sm:$0xff]   ;;  %v1655_v3 = vld [vmem:[%s2384_s0 + $0x10] ss:$24 sps:$4 sm:$0xff]   ;;  %v1660_v5 = vld [vmem:[%s2384_s0 + $0x44] ss:$24 sps:$4 sm:$0xff]  }
  0x18   :  { %1330 = vmatprep.subr.bf16.mxu0 %v1592_v14  ;;  %1516 = vmatprep.subr.bf16.mxu1 %v1592_v14  ;;  %v1658_v4 = vld [vmem:[%s2384_s0 + $0x3c] ss:$24 sps:$4 sm:$0xff]   ;;  %v1662_v6 = vld [vmem:[%s2384_s0 + $0x38] ss:$24 sps:$4 sm:$0xff]   ;;  %v1664_v8 = vld [vmem:[%s2384_s0 + $0x6c] ss:$24 sps:$4 sm:$0xff]  }
  0x19   :  { %v1663_v7 = vld [vmem:[%s2384_s0 + $0x40] ss:$24 sps:$4 sm:$0xff]   ;;  %v1666_v9 = vld [vmem:[%s2384_s0 + $0x74] ss:$24 sps:$4 sm:$0xff]   ;;  %v1669_v11 = vld [vmem:[%s2384_s0 + $0x70] ss:$24 sps:$4 sm:$0xff]  }
  0x1a   :  { %v1668_v10 = vld [vmem:[%s2384_s0 + $0x68] ss:$24 sps:$4 sm:$0xff]   ;;  %v1670_v12 = vld [vmem:[%s2384_s0 + $0x9c] ss:$24 sps:$4 sm:$0xff]   ;;  %v1674_v14 = vld [vmem:[%s2384_s0 + $0x98] ss:$24 sps:$4 sm:$0xff]  }
  0x1b   :  { %1331 = vmatpush3.bf16.msra.mxu0 %v1593_v15  ;;  %1524 = vmatpush3.bf16.msra.mxu1 %v1593_v15  ;;  %v1672_v13 = vld [vmem:[%s2384_s0 + $0xa4] ss:$24 sps:$4 sm:$0xff]   ;;  %v1675_v15 = vld [vmem:[%s2384_s0 + $0xa0] ss:$24 sps:$4 sm:$0xff]  }
  0x1c   :  { %1332 = vmatprep.subr.bf16.mxu0 %v1594_v16  ;;  %1517 = vmatprep.subr.bf16.mxu1 %v1594_v16  ;;  %v1676_v16 = vld [vmem:[%s2384_s0 + $0xcc] ss:$24 sps:$4 sm:$0xff]  }
  0x1f   :  { %1333 = vmatpush3.bf16.msra.mxu0 %v1595_v17  ;;  %1525 = vmatpush3.bf16.msra.mxu1 %v1595_v17  ;;  %v1678_v17 = vld [vmem:[%s2384_s0 + $0xd4] ss:$24 sps:$4 sm:$0xff]  }
  0x20   :  { %1382 = vmatprep.subr.bf16.mxu1 %v1602_v20  ;;  %1446 = vmatprep.subr.bf16.mxu0 %v1603_v21  ;;  %v1682_v20 = vld [vmem:[%s2384_s0 + $0xfc] ss:$24 sps:$4 sm:$0xff]  }
  0x21   :  { %v1684_v21 = vld [vmem:[%s2384_s0 + $0x104] ss:$24 sps:$4 sm:$0xff]  }
  0x22   :  { %746 = vmatmul.mubr.bf16.vlgmr.msra.gmra.mrb[0].mxu0 %v1596_v18  ;;  %778 = vmatmul.mubr.bf16.vlgmr.msra.gmra.mrb[0].mxu1 %v1599_v19  ;;  %v1680_v18 = vld [vmem:[%s2384_s0 + $0xc8] ss:$24 sps:$4 sm:$0xff]  }
  0x23   :  { %1383 = vmatpush3.bf16.msra.mxu1 %v1604_v22  ;;  %1447 = vmatpush3.bf16.msra.mxu0 %v1605_v23  ;;  %v1681_v19 = vld [vmem:[%s2384_s0 + $0xd0] ss:$24 sps:$4 sm:$0xff]   ;;  %v1687_v23 = vld [vmem:[%s2384_s0 + $0x100] ss:$24 sps:$4 sm:$0xff]  }
  0x24   :  { %1384 = vmatprep.subr.bf16.mxu1 %v1606_v24  ;;  %1448 = vmatprep.subr.bf16.mxu0 %v1607_v25  ;;  %v1686_v22 = vld [vmem:[%s2384_s0 + $0xf8] ss:$24 sps:$4 sm:$0xff]   ;;  %v1688_v24 = vld [vmem:[%s2384_s0 + $0x12c] ss:$24 sps:$4 sm:$0xff]  }
  0x25   :  { %753 = vmatprep.mubr.bf16.mxu0 %v1610_v26  ;;  %785 = vmatprep.mubr.bf16.mxu1 %v1612_v28  ;;  %v1690_v25 = vld [vmem:[%s2384_s0 + $0x134] ss:$24 sps:$4 sm:$0xff]   ;;  %v1692_v26 = vld [vmem:[%s2384_s0 + $0x128] ss:$24 sps:$4 sm:$0xff]  }
  0x26   :  { %v1694_v28 = vld [vmem:[%s2384_s0 + $0x15c] ss:$24 sps:$4 sm:$0xff]  }
  0x27   :  { %1385 = vmatpush3.bf16.msra.mxu1 %v1608_v27  ;;  %1449 = vmatpush3.bf16.msra.mxu0 %v1609_v29  ;;  %v1693_v27 = vld [vmem:[%s2384_s0 + $0x130] ss:$24 sps:$4 sm:$0xff]   ;;  %v1696_v29 = vld [vmem:[%s2384_s0 + $0x164] ss:$24 sps:$4 sm:$0xff]  }
  0x28   :  { %1386 = vmatprep.subr.bf16.mxu1 %v1616_v30  ;;  %1450 = vmatprep.subr.bf16.mxu0 %v1617_v32  ;;  %v1698_v30 = vld [vmem:[%s2384_s0 + $0x158] ss:$24 sps:$4 sm:$0xff]  }
  0x2a   :  { %754 = vmatmul.mubr.bf16.gmra.mrb[4].mxu0 %v1614_v31  ;;  %786 = vmatmul.mubr.bf16.gmra.mrb[4].mxu1 %v1615_v33  ;;  %v1699_v31 = vld [vmem:[%s2384_s0 + $0x160] ss:$24 sps:$4 sm:$0xff]  }
  0x2b   :  { %1387 = vmatpush3.bf16.msra.mxu1 %v1618_v34  ;;  %1451 = vmatpush3.bf16.msra.mxu0 %v1619_v35 }
  0x2c   :  { %1388 = vmatprep.subr.bf16.mxu1 %v1620_v36  ;;  %1452 = vmatprep.subr.bf16.mxu0 %v1621_v37 }
  0x2d   :  { %761 = vmatprep.mubr.bf16.mxu0 %v1624_v38  ;;  %793 = vmatprep.mubr.bf16.mxu1 %v1626_v40 }
  0x2f   :  { %1389 = vmatpush3.bf16.msra.mxu1 %v1622_v39  ;;  %1453 = vmatpush3.bf16.msra.mxu0 %v1623_v41 }
  0x30   :  { %1390 = vmatprep.subr.bf16.mxu1 %v1630_v42  ;;  %1454 = vmatprep.subr.bf16.mxu0 %v1631_v45 }
  0x32   :  { %762 = vmatmul.mubr.bf16.gmra.mrb[8].mxu0 %v1628_v43  ;;  %794 = vmatmul.mubr.bf16.gmra.mrb[8].mxu1 %v1629_v44 }
  0x33   :  { %1391 = vmatpush3.bf16.msra.mxu1 %v1632_v46  ;;  %1455 = vmatpush3.bf16.msra.mxu0 %v1633_v47 }
  0x34   :  { %1392 = vmatprep.subr.bf16.mxu1 %v1634_v48  ;;  %1456 = vmatprep.subr.bf16.mxu0 %v1635_v49 }
  0x35   :  { %769 = vmatprep.mubr.bf16.mxu0 %v1638_v50  ;;  %801 = vmatprep.mubr.bf16.mxu1 %v1640_v51 }
  0x37   :  { %1393 = vmatpush3.bf16.msra.mxu1 %v1636_v52  ;;  %1457 = vmatpush3.bf16.msra.mxu0 %v1637_v53 }
  0x38   :  { %1394 = vmatprep.subr.bf16.mxu1 %v1644_v54  ;;  %1458 = vmatprep.subr.bf16.mxu0 %v1645_v57 }
  0x3a   :  { %770 = vmatmul.mubr.bf16.gmra.mrb[12].mxu0 %v1642_v55  ;;  %802 = vmatmul.mubr.bf16.gmra.mrb[12].mxu1 %v1643_v56  ;;  %v14_v56 = vlaneseq }
  0x3b   :  { %1395 = vmatpush3.bf16.msra.mxu1 %v1646_v58  ;;  %1459 = vmatpush3.bf16.msra.mxu0 %v1647_v59 }
  0x3c   :  { %1396 = vmatprep.subr.bf16.mxu1 %v1648_v60  ;;  %1460 = vmatprep.subr.bf16.mxu0 %v1649_v61  ;;  %v2058_v61 = vand.u32 127, %v14_v56 }
  0x3d   :  { %842 = vmatprep.mubr.bf16.mxu1 %v1654_v0  ;;  %939 = vmatprep.mubr.bf16.mxu0 %v1657_v2 }
  0x3e   :  { %vm16_vm0 = vcmp.eq.s32.totalorder %v2058_v61, 3  ;;  %vm18_vm1 = vcmp.eq.s32.totalorder %v2058_v61, 4  ;;  %vm20_vm2 = vcmp.eq.s32.totalorder %v2058_v61, 5  ;;  %vm34_vm3 = vcmp.eq.s32.totalorder %v2058_v61, 1 }
  0x3f   :  { %1397 = vmatpush3.bf16.msra.mxu1 %v1650_v62  ;;  %1461 = vmatpush3.bf16.msra.mxu0 %v1651_v63  ;;  %vm36_vm4 = vcmp.eq.s32.totalorder %v2058_v61, 2 }
  0x42   :  { %843 = vmatmul.mubr.bf16.vlgmr.msra.gmra.mrb[16].mxu1 %v1652_v1  ;;  %940 = vmatmul.mubr.bf16.vlgmr.msra.gmra.mrb[16].mxu0 %v1655_v3 }
  0x43   :  { %850 = vmatprep.mubr.bf16.mxu1 %v1658_v4  ;;  %947 = vmatprep.mubr.bf16.mxu0 %v1660_v5 }
  0x4a   :  { %851 = vmatmul.mubr.bf16.gmra.mrb[20].mxu1 %v1662_v6  ;;  %948 = vmatmul.mubr.bf16.gmra.mrb[20].mxu0 %v1663_v7 }
  0x4b   :  { %858 = vmatprep.mubr.bf16.mxu1 %v1664_v8  ;;  %955 = vmatprep.mubr.bf16.mxu0 %v1666_v9  ;;  %v1732_v8 = vmov 0.14398701  }
  0x4c   :  { %v17_v9 = vsel %vm16_vm0, 0.0, %v1732_v8 }
  0x52   :  { %859 = vmatmul.mubr.bf16.gmra.mrb[24].mxu1 %v1668_v10  ;;  %956 = vmatmul.mubr.bf16.gmra.mrb[24].mxu0 %v1669_v11 }
  0x53   :  { %866 = vmatprep.mubr.bf16.mxu1 %v1670_v12  ;;  %963 = vmatprep.mubr.bf16.mxu0 %v1672_v13 }
  0x5a   :  { %867 = vmatmul.mubr.bf16.gmra.mrb[28].mxu1 %v1674_v14  ;;  %964 = vmatmul.mubr.bf16.gmra.mrb[28].mxu0 %v1675_v15 }
  0x5b   :  { %874 = vmatprep.mubr.bf16.mxu1 %v1676_v16  ;;  %971 = vmatprep.mubr.bf16.mxu0 %v1678_v17 }
  0x62   :  { %875 = vmatmul.mubr.bf16.gmra.mrb[32].mxu1 %v1680_v18  ;;  %972 = vmatmul.mubr.bf16.gmra.mrb[32].mxu0 %v1681_v19  ;;  %v19_v18 = vsel %vm18_vm1, 0.0, %v17_v9 }
  0x63   :  { %882 = vmatprep.mubr.bf16.mxu1 %v1682_v20  ;;  %979 = vmatprep.mubr.bf16.mxu0 %v1684_v21  ;;  %v2085_v21 = vsel %vm20_vm2, 0.0, %v19_v18  ;;  %v1736_v18 = vmov 4.0  }
  0x6a   :  { %883 = vmatmul.mubr.bf16.gmra.mrb[36].mxu1 %v1686_v22  ;;  %980 = vmatmul.mubr.bf16.gmra.mrb[36].mxu0 %v1687_v23 }
  0x6b   :  { %890 = vmatprep.mubr.bf16.mxu1 %v1688_v24  ;;  %987 = vmatprep.mubr.bf16.mxu0 %v1690_v25 }
  0x72   :  { %891 = vmatmul.mubr.bf16.gmra.mrb[40].mxu1 %v1692_v26  ;;  %988 = vmatmul.mubr.bf16.gmra.mrb[40].mxu0 %v1693_v27 }
  0x73   :  { %898 = vmatprep.mubr.bf16.mxu1 %v1694_v28  ;;  %995 = vmatprep.mubr.bf16.mxu0 %v1696_v29 }
  0x7a   :  { %899 = vmatmul.mubr.bf16.gmra.mrb[44].mxu1 %v1698_v30  ;;  %996 = vmatmul.mubr.bf16.gmra.mrb[44].mxu0 %v1699_v31 }
  0xf5   :  { %v1334_v32 = vpop.f32.mrb[0].mxu0  ;;  %v1358_v33 = vpop.f32.mrb[0].mxu1 }
  0xf6   :  { %v1335_v34 = vpop.f32.mrb[1].mxu0  ;;  %v1359_v35 = vpop.f32.mrb[1].mxu1 }
  0xf7   :  { %v1336_v36 = vadd.f32 %v1335_v34, %v1334_v32  ;;  %v2046_v37 = vadd.f32 %v1359_v35, %v1358_v33  ;;  %v1337_v38 = vpop.f32.mrb[2].mxu0  ;;  %v1361_v39 = vpop.f32.mrb[2].mxu1 }
  0xf8   :  { %v1338_v40 = vpop.f32.mrb[3].mxu0  ;;  %v1362_v41 = vpop.f32.mrb[3].mxu1 }
  0xf9   :  { %v1339_v42 = vadd.f32 %v1338_v40, %v1337_v38  ;;  %v2048_v43 = vadd.f32 %v1362_v41, %v1361_v39  ;;  %v748_v26 = vadd.f32 %v1336_v36, %v2085_v21  ;;  %v1733_v41 = vmov 3.4965  }
  0xfb   :  { %v751_v33 = vadd.f32 %v1339_v42, %v2085_v21 }
  0xfd   :  { %v1340_v44 = vpop.f32.mrb[4].mxu0  ;;  %v1364_v45 = vpop.f32.mrb[4].mxu1 }
  0xfe   :  { %v1341_v46 = vpop.f32.mrb[5].mxu0  ;;  %v1365_v47 = vpop.f32.mrb[5].mxu1 }
  0xff   :  { %v2050_v48 = vadd.f32 %v1341_v46, %v1340_v44  ;;  %v2052_v49 = vadd.f32 %v1365_v47, %v1364_v45  ;;  %v1343_v50 = vpop.f32.mrb[6].mxu0  ;;  %v1367_v51 = vpop.f32.mrb[6].mxu1  ;;  %v22_v44 = vsel %vm16_vm0, 1.998, %v1733_v41 }
 0x100   :  { %v1344_v52 = vpop.f32.mrb[7].mxu0  ;;  %v1368_v53 = vpop.f32.mrb[7].mxu1  ;;  %v23_v42 = vsel %vm18_vm1, 1.998, %v22_v44 }
 0x101   :  { %v2054_v54 = vadd.f32 %v1344_v52, %v1343_v50  ;;  %v2056_v55 = vadd.f32 %v1368_v53, %v1367_v51  ;;  %v756_v51 = vadd.f32 %v2050_v48, %v2085_v21 }
 0x105   :  { %v1346_v57 = vpop.f32.mrb[8].mxu0  ;;  %v1370_v58 = vpop.f32.mrb[8].mxu1 }
 0x106   :  { %v1347_v59 = vpop.f32.mrb[9].mxu0  ;;  %v1371_v60 = vpop.f32.mrb[9].mxu1 }
 0x107   :  { %v2060_v62 = vadd.f32 %v1347_v59, %v1346_v57  ;;  %v2062_v63 = vadd.f32 %v1371_v60, %v1370_v58  ;;  %v1349_v0 = vpop.f32.mrb[10].mxu0  ;;  %v1373_v1 = vpop.f32.mrb[10].mxu1  ;;  %v1734_v60 = vmov 0.5  }
 0x108   :  { %v1350_v2 = vpop.f32.mrb[11].mxu0  ;;  %v1374_v3 = vpop.f32.mrb[11].mxu1 }
 0x109   :  { %v2064_v4 = vadd.f32 %v1350_v2, %v1349_v0  ;;  %v2066_v5 = vadd.f32 %v1374_v3, %v1373_v1  ;;  %v25_v0 = vsel %vm16_vm0, 0.0, %v1734_v60  ;;  %v1735_v1 = vmov 1.0  }
 0x10a   :  { %v35_v2 = vsel %vm34_vm3, 8.0, %v1735_v1  ;;  %v759_v3 = vadd.f32 %v2054_v54, %v2085_v21  ;;  %v28_v54 = vsel %vm16_vm0, 2.0, %v1736_v18 }
 0x10b   :  { %v767_v44 = vadd.f32 %v2064_v4, %v2085_v21 }
 0x10d   :  { %v1352_v6 = vpop.f32.mrb[12].mxu0  ;;  %v1376_v7 = vpop.f32.mrb[12].mxu1 }
 0x10e   :  { %v1353_v10 = vpop.f32.mrb[13].mxu0  ;;  %v1377_v11 = vpop.f32.mrb[13].mxu1 }
 0x10f   :  { %v2072_v12 = vadd.f32 %v1353_v10, %v1352_v6  ;;  %v2074_v13 = vadd.f32 %v1377_v11, %v1376_v7  ;;  %v1355_v14 = vpop.f32.mrb[14].mxu0  ;;  %v1379_v15 = vpop.f32.mrb[14].mxu1  ;;  %v26_v10 = vsel %vm18_vm1, 0.0, %v25_v0  ;;  %v37_v11 = vsel %vm36_vm4, 64.0, %v35_v2 }
 0x110   :  { %v1356_v16 = vpop.f32.mrb[15].mxu0  ;;  %v1380_v17 = vpop.f32.mrb[15].mxu1 }
 0x111   :  { %v2079_v19 = vadd.f32 %v1356_v16, %v1355_v14  ;;  %v2081_v20 = vadd.f32 %v1380_v17, %v1379_v15  ;;  %v2105_v14 = vsel %vm20_vm2, 1.998, %v23_v42 }
 0x115   :  { %v1398_v22 = vpop.f32.mrb[16].mxu1  ;;  %v1462_v23 = vpop.f32.mrb[16].mxu0 }
 0x116   :  { %v1399_v24 = vpop.f32.mrb[17].mxu1  ;;  %v1463_v25 = vpop.f32.mrb[17].mxu0 }
 0x117   :  { %v1400_v27 = vadd.f32 %v1399_v24, %v1398_v22  ;;  %v1464_v28 = vadd.f32 %v1463_v25, %v1462_v23  ;;  %v1401_v29 = vpop.f32.mrb[18].mxu1  ;;  %v1465_v30 = vpop.f32.mrb[18].mxu0  ;;  %v1737_v22 = vmov 0.25  }
 0x118   :  { %v1402_v31 = vpop.f32.mrb[19].mxu1  ;;  %v1466_v32 = vpop.f32.mrb[19].mxu0  ;;  %v31_v23 = vsel %vm16_vm0, 0.5, %v1737_v22  ;;  %v775_v22 = vadd.f32 %v2079_v19, %v2085_v21 }
 0x119   :  { %v845_v34 = vadd.f32 %v1400_v27, %v748_v26  ;;  %v1403_v35 = vadd.f32 %v1402_v31, %v1401_v29  ;;  %v1467_v38 = vadd.f32 %v1466_v32, %v1465_v30  ;;  %v2113_v26 = vsel %vm20_vm2, 0.0, %v26_v10 }
 0x11a   :  { %v38_v27 = vsel %vm16_vm0, 512.0, %v37_v11  ;;  %v764_v29 = vadd.f32 %v2060_v62, %v2085_v21 }
 0x11b   :  { %v942_v39 = vadd.f32 %v1464_v28, %v845_v34  ;;  %v848_v40 = vadd.f32 %v1403_v35, %v751_v33 }
 0x11d   :  { %1700 = vtanh.f32 %v942_v39  ;;  %v945_v45 = vadd.f32 %v1467_v38, %v848_v40  ;;  %v1404_v36 = vpop.f32.mrb[20].mxu1  ;;  %v1468_v46 = vpop.f32.mrb[20].mxu0  ;;  %v29_v38 = vsel %vm18_vm1, 2.0, %v28_v54  ;;  %v32_v39 = vsel %vm18_vm1, 0.5, %v31_v23 }
 0x11e   :  { %v1405_v47 = vpop.f32.mrb[21].mxu1  ;;  %v1469_v50 = vpop.f32.mrb[21].mxu0 }
 0x11f   :  { %1702 = vtanh.f32 %v945_v45  ;;  %v1406_v52 = vadd.f32 %v1405_v47, %v1404_v36  ;;  %v1470_v53 = vadd.f32 %v1469_v50, %v1468_v46  ;;  %v1407_v56 = vpop.f32.mrb[22].mxu1  ;;  %v1471_v57 = vpop.f32.mrb[22].mxu0  ;;  %v39_v46 = vsel %vm18_vm1, 2560.0, %v38_v27 }
 0x120   :  { %v1408_v58 = vpop.f32.mrb[23].mxu1  ;;  %v1472_v59 = vpop.f32.mrb[23].mxu0  ;;  %v2141_v60 = vsel %vm20_vm2, 12800.0, %v39_v46  ;;  %v780_v46 = vadd.f32 %v2046_v37, %v2085_v21 }
 0x121   :  { %v853_v6 = vadd.f32 %v1406_v52, %v756_v51  ;;  %v1409_v48 = vadd.f32 %v1408_v58, %v1407_v56  ;;  %v1473_v7 = vadd.f32 %v1472_v59, %v1471_v57  ;;  %v2132_v52 = vsel %vm20_vm2, 2.0, %v29_v38 }
 0x123   :  { %v950_v8 = vadd.f32 %v1470_v53, %v853_v6  ;;  %v856_v9 = vadd.f32 %v1409_v48, %v759_v3  ;;  %v2136_v53 = vsel %vm20_vm2, 0.5, %v32_v39 }
 0x125   :  { %1704 = vtanh.f32 %v950_v8  ;;  %v953_v15 = vadd.f32 %v1473_v7, %v856_v9  ;;  %v1410_v16 = vpop.f32.mrb[24].mxu1  ;;  %v1474_v17 = vpop.f32.mrb[24].mxu0  ;;  %v772_v7 = vadd.f32 %v2072_v12, %v2085_v21 }
 0x126   :  { %v1411_v24 = vpop.f32.mrb[25].mxu1  ;;  %v1475_v25 = vpop.f32.mrb[25].mxu0 }
 0x127   :  { %v1701_v28 = vpop.eup %1700  ;;  %1706 = vtanh.f32 %v953_v15  ;;  %v1412_v30 = vadd.f32 %v1411_v24, %v1410_v16  ;;  %v1476_v31 = vadd.f32 %v1475_v25, %v1474_v17  ;;  %v1413_v32 = vpop.f32.mrb[26].mxu1 }
 0x128   :  { %v1477_v33 = vpop.f32.mrb[26].mxu0  ;;  %v1414_v34 = vpop.f32.mrb[27].mxu1  ;;  %v1020_v40 = vmul.f32 %v1701_v28, %v2105_v14 }
 0x129   :  { %v1478_v35 = vpop.f32.mrb[27].mxu0  ;;  %v1703_v41 = vpop.eup %1702  ;;  %v861_v62 = vadd.f32 %v1412_v30, %v764_v29  ;;  %v1415_v45 = vadd.f32 %v1414_v34, %v1413_v32 }
 0x12a   :  { %v1479_v36 = vadd.f32 %v1478_v35, %v1477_v33  ;;  %v1036_v47 = vsub.f32 %v1020_v40, %v2113_v26  ;;  %v1021_v50 = vmul.f32 %v1703_v41, %v2105_v14 }
 0x12b   :  { %v958_v42 = vadd.f32 %v1476_v31, %v861_v62  ;;  %v864_v51 = vadd.f32 %v1415_v45, %v767_v44 }
 0x12c   :  { %v1526_v4 = vround.rtne.f32 %v1036_v47  ;;  %v1037_v56 = vsub.f32 %v1021_v50, %v2113_v26 }
 0x12d   :  { %1708 = vtanh.f32 %v958_v42  ;;  %v961_v57 = vadd.f32 %v1479_v36, %v864_v51  ;;  %v1416_v58 = vpop.f32.mrb[28].mxu1  ;;  %v1480_v59 = vpop.f32.mrb[28].mxu0 }
 0x12e   :  { %v1417_v0 = vpop.f32.mrb[29].mxu1  ;;  %v1481_v1 = vpop.f32.mrb[29].mxu0  ;;  %v1101_v2 = vadd.f32 %v1526_v4, %v2132_v52  ;;  %v1068_v3 = vmul.f32 %v1526_v4, %v2136_v53  ;;  %v1527_v6 = vround.rtne.f32 %v1037_v56 }
 0x12f   :  { %v1705_v48 = vpop.eup %1704  ;;  %1710 = vtanh.f32 %v961_v57  ;;  %v1418_v8 = vadd.f32 %v1417_v0, %v1416_v58  ;;  %v1482_v9 = vadd.f32 %v1481_v1, %v1480_v59  ;;  %v1419_v10 = vpop.f32.mrb[30].mxu1  ;;  %v783_v1 = vadd.f32 %v2048_v43, %v2085_v21 }
 0x130   :  { %v1483_v11 = vpop.f32.mrb[30].mxu0  ;;  %v1420_v61 = vpop.f32.mrb[31].mxu1  ;;  %v1117_v16 = vmul.f32 %v1101_v2, %v2141_v60  ;;  %1085 = vst.msk [vmem:[%s2385_s3] sm:$0xff] %vm1084_vm5, %v1068_v3  ;;  %v1069_v17 = vmul.f32 %v1527_v6, %v2136_v53  ;;  %v1102_v18 = vadd.f32 %v1527_v6, %v2132_v52  ;;  %v1022_v12 = vmul.f32 %v1705_v48, %v2105_v14 }
 0x131   :  { %v1484_v15 = vpop.f32.mrb[31].mxu0  ;;  %v1707_v54 = vpop.eup %1706  ;;  %v869_v23 = vadd.f32 %v1418_v8, %v772_v7  ;;  %v1421_v24 = vadd.f32 %v1420_v61, %v1419_v10 }
 0x132   :  { %v1485_v25 = vadd.f32 %v1484_v15, %v1483_v11  ;;  %v1133_v27 = vsel %vm1084_vm5, %v1117_v16, 0.0  ;;  %1086 = vst.msk [vmem:[%s2385_s3 + $0x8] sm:$0xff] %vm1084_vm5, %v1069_v17  ;;  %v1118_v28 = vmul.f32 %v1102_v18, %v2141_v60  ;;  %v1038_v29 = vsub.f32 %v1022_v12, %v2113_v26 }
 0x133   :  { %v1023_v30 = vmul.f32 %v1707_v54, %v2105_v14  ;;  %v966_v31 = vadd.f32 %v1482_v9, %v869_v23  ;;  %v872_v32 = vadd.f32 %v1421_v24, %v775_v22  ;;  %1134 = vadd.xlane.f32.xlu0 %v1133_v27  ;;  %v788_v27 = vadd.f32 %v2052_v49, %v2085_v21 }
 0x134   :  { %v1528_v19 = vround.rtne.f32 %v1038_v29  ;;  %v1136_v41 = vsel %vm1084_vm5, %v1118_v28, 0.0 }
 0x135   :  { %v1039_v33 = vsub.f32 %v1023_v30, %v2113_v26  ;;  %1712 = vtanh.f32 %v966_v31  ;;  %v969_v34 = vadd.f32 %v1485_v25, %v872_v32  ;;  %v1422_v35 = vpop.f32.mrb[32].mxu1  ;;  %v1486_v38 = vpop.f32.mrb[32].mxu0 }
 0x136   :  { %v1423_v39 = vpop.f32.mrb[33].mxu1  ;;  %v1487_v40 = vpop.f32.mrb[33].mxu0  ;;  %v1103_v44 = vadd.f32 %v1528_v19, %v2132_v52  ;;  %v1070_v62 = vmul.f32 %v1528_v19, %v2136_v53 }
 0x137   :  { %v1529_v45 = vround.rtne.f32 %v1039_v33  ;;  %v1709_v36 = vpop.eup %1708  ;;  %1714 = vtanh.f32 %v969_v34  ;;  %v1424_v47 = vadd.f32 %v1423_v39, %v1422_v35  ;;  %v1488_v50 = vadd.f32 %v1487_v40, %v1486_v38  ;;  %v1425_v42 = vpop.f32.mrb[34].mxu1  ;;  %1137 = vadd.xlane.f32.xlu0 %v1136_v41 }
 0x138   :  { %v1489_v51 = vpop.f32.mrb[34].mxu0  ;;  %v1426_v4 = vpop.f32.mrb[35].mxu1  ;;  %v1119_v57 = vmul.f32 %v1103_v44, %v2141_v60  ;;  %1087 = vst.msk [vmem:[%s2385_s3 + $0x10] sm:$0xff] %vm1084_vm5, %v1070_v62  ;;  %v1024_v37 = vmul.f32 %v1709_v36, %v2105_v14  ;;  %v791_v39 = vadd.f32 %v2056_v55, %v2085_v21 }
 0x139   :  { %v1490_v56 = vpop.f32.mrb[35].mxu0  ;;  %v1071_v58 = vmul.f32 %v1529_v45, %v2136_v53  ;;  %v1104_v59 = vadd.f32 %v1529_v45, %v2132_v52  ;;  %v1711_v0 = vpop.eup %1710  ;;  %v877_v2 = vadd.f32 %v1424_v47, %v780_v46  ;;  %v1427_v3 = vadd.f32 %v1426_v4, %v1425_v42 }
 0x13a   :  { %v1491_v6 = vadd.f32 %v1490_v56, %v1489_v51  ;;  %v1139_v48 = vsel %vm1084_vm5, %v1119_v57, 0.0  ;;  %v1040_v8 = vsub.f32 %v1024_v37, %v2113_v26  ;;  %v1025_v9 = vmul.f32 %v1711_v0, %v2105_v14 }
 0x13b   :  { %1088 = vst.msk [vmem:[%s2385_s3 + $0x18] sm:$0xff] %vm1084_vm5, %v1071_v58  ;;  %v1120_v7 = vmul.f32 %v1104_v59, %v2141_v60  ;;  %v974_v10 = vadd.f32 %v1488_v50, %v877_v2  ;;  %v880_v11 = vadd.f32 %v1427_v3, %v783_v1  ;;  %1140 = vadd.xlane.f32.xlu1 %v1139_v48 }
 0x13c   :  { %v1530_v43 = vround.rtne.f32 %v1040_v8  ;;  %v1041_v61 = vsub.f32 %v1025_v9, %v2113_v26  ;;  %v796_v3 = vadd.f32 %v2062_v63, %v2085_v21 }
 0x13d   :  { %1716 = vtanh.f32 %v974_v10  ;;  %v977_v15 = vadd.f32 %v1491_v6, %v880_v11  ;;  %v1428_v16 = vpop.f32.mrb[36].mxu1  ;;  %v1492_v17 = vpop.f32.mrb[36].mxu0  ;;  %v1142_v54 = vsel %vm1084_vm5, %v1120_v7, 0.0 }
 0x13e   :  { %v1429_v18 = vpop.f32.mrb[37].mxu1  ;;  %v1493_v12 = vpop.f32.mrb[37].mxu0  ;;  %v1072_v22 = vmul.f32 %v1530_v43, %v2136_v53  ;;  %v1105_v23 = vadd.f32 %v1530_v43, %v2132_v52  ;;  %v1531_v24 = vround.rtne.f32 %v1041_v61 }
 0x13f   :  { %v1713_v25 = vpop.eup %1712  ;;  %1718 = vtanh.f32 %v977_v15  ;;  %v1430_v28 = vadd.f32 %v1429_v18, %v1428_v16  ;;  %v1494_v29 = vadd.f32 %v1493_v12, %v1492_v17  ;;  %v1431_v30 = vpop.f32.mrb[38].mxu1  ;;  %1143 = vadd.xlane.f32.xlu1 %v1142_v54  ;;  %v799_v16 = vadd.f32 %v2066_v5, %v2085_v21 }
 0x140   :  { %v1495_v31 = vpop.f32.mrb[38].mxu0  ;;  %v1432_v32 = vpop.f32.mrb[39].mxu1  ;;  %1089 = vst.msk [vmem:[%s2385_s3 + $0x20] sm:$0xff] %vm1084_vm5, %v1072_v22  ;;  %v1121_v33 = vmul.f32 %v1105_v23, %v2141_v60  ;;  %v1073_v34 = vmul.f32 %v1531_v24, %v2136_v53  ;;  %v1106_v35 = vadd.f32 %v1531_v24, %v2132_v52  ;;  %v1026_v49 = vmul.f32 %v1713_v25, %v2105_v14 }
 0x141   :  { %v1496_v19 = vpop.f32.mrb[39].mxu0  ;;  %v1715_v38 = vpop.eup %1714  ;;  %v885_v40 = vadd.f32 %v1430_v28, %v788_v27  ;;  %v1433_v41 = vadd.f32 %v1432_v32, %v1431_v30 }
 0x142   :  { %v1497_v44 = vadd.f32 %v1496_v19, %v1495_v31  ;;  %v1145_v62 = vsel %vm1084_vm5, %v1121_v33, 0.0  ;;  %1090 = vst.msk [vmem:[%s2385_s3 + $0x28] sm:$0xff] %vm1084_vm5, %v1073_v34  ;;  %v1122_v45 = vmul.f32 %v1106_v35, %v2141_v60  ;;  %v1042_v36 = vsub.f32 %v1026_v49, %v2113_v26 }
 0x143   :  { %v1027_v46 = vmul.f32 %v1715_v38, %v2105_v14  ;;  %v982_v47 = vadd.f32 %v1494_v29, %v885_v40  ;;  %v888_v50 = vadd.f32 %v1433_v41, %v791_v39  ;;  %1146 = vadd.xlane.f32.xlu0 %v1145_v62  ;;  %v804_v39 = vadd.f32 %v2074_v13, %v2085_v21 }
 0x144   :  { %v1148_v55 = vsel %vm1084_vm5, %v1122_v45, 0.0  ;;  %v1532_v42 = vround.rtne.f32 %v1042_v36 }
 0x145   :  { %v1043_v51 = vsub.f32 %v1027_v46, %v2113_v26  ;;  %1720 = vtanh.f32 %v982_v47  ;;  %v985_v4 = vadd.f32 %v1497_v44, %v888_v50  ;;  %v1434_v56 = vpop.f32.mrb[40].mxu1  ;;  %v1498_v57 = vpop.f32.mrb[40].mxu0  ;;  %1149 = vadd.xlane.f32.xlu1 %v1148_v55 }
 0x146   :  { %v1435_v58 = vpop.f32.mrb[41].mxu1  ;;  %v1499_v59 = vpop.f32.mrb[41].mxu0  ;;  %v1074_v37 = vmul.f32 %v1532_v42, %v2136_v53  ;;  %v1107_v0 = vadd.f32 %v1532_v42, %v2132_v52  ;;  %v807_v42 = vadd.f32 %v2081_v20, %v2085_v21 }
 0x147   :  { %v1533_v1 = vround.rtne.f32 %v1043_v51  ;;  %v1717_v2 = vpop.eup %1716  ;;  %1722 = vtanh.f32 %v985_v4  ;;  %v1436_v6 = vadd.f32 %v1435_v58, %v1434_v56  ;;  %v1500_v48 = vadd.f32 %v1499_v59, %v1498_v57  ;;  %v1437_v7 = vpop.f32.mrb[42].mxu1 }
 0x148   :  { %v1501_v8 = vpop.f32.mrb[42].mxu0  ;;  %v1438_v9 = vpop.f32.mrb[43].mxu1  ;;  %1091 = vst.msk [vmem:[%s2385_s3 + $0x30] sm:$0xff] %vm1084_vm5, %v1074_v37  ;;  %v1123_v11 = vmul.f32 %v1107_v0, %v2141_v60  ;;  %v1028_v63 = vmul.f32 %v1717_v2, %v2105_v14 }
 0x149   :  { %v1502_v10 = vpop.f32.mrb[43].mxu0  ;;  %v1075_v43 = vmul.f32 %v1533_v1, %v2136_v53  ;;  %v1108_v61 = vadd.f32 %v1533_v1, %v2132_v52  ;;  %v1719_v15 = vpop.eup %1718  ;;  %v893_v17 = vadd.f32 %v1436_v6, %v796_v3  ;;  %v1439_v18 = vadd.f32 %v1438_v9, %v1437_v7 }
 0x14a   :  { %v1503_v12 = vadd.f32 %v1502_v10, %v1501_v8  ;;  %v1151_v54 = vsel %vm1084_vm5, %v1123_v11, 0.0  ;;  %v1044_v23 = vsub.f32 %v1028_v63, %v2113_v26  ;;  %v1029_v24 = vmul.f32 %v1719_v15, %v2105_v14 }
 0x14b   :  { %1092 = vst.msk [vmem:[%s2385_s3 + $0x38] sm:$0xff] %vm1084_vm5, %v1075_v43  ;;  %v1124_v22 = vmul.f32 %v1108_v61, %v2141_v60  ;;  %v990_v25 = vadd.f32 %v1500_v48, %v893_v17  ;;  %v896_v27 = vadd.f32 %v1439_v18, %v799_v16  ;;  %1152 = vadd.xlane.f32.xlu0 %v1151_v54 }
 0x14c   :  { %v1534_v28 = vround.rtne.f32 %v1044_v23  ;;  %v1045_v29 = vsub.f32 %v1029_v24, %v2113_v26 }
 0x14d   :  { %v1154_v5 = vsel %vm1084_vm5, %v1124_v22, 0.0  ;;  %1724 = vtanh.f32 %v990_v25  ;;  %v993_v30 = vadd.f32 %v1503_v12, %v896_v27  ;;  %v1440_v31 = vpop.f32.mrb[44].mxu1  ;;  %v1504_v32 = vpop.f32.mrb[44].mxu0 }
 0x14e   :  { %1155 = vadd.xlane.f32.xlu1 %v1154_v5  ;;  %v1441_v19 = vpop.f32.mrb[45].mxu1  ;;  %v1505_v33 = vpop.f32.mrb[45].mxu0  ;;  %v1076_v34 = vmul.f32 %v1534_v28, %v2136_v53  ;;  %v1109_v35 = vadd.f32 %v1534_v28, %v2132_v52  ;;  %v1535_v49 = vround.rtne.f32 %v1045_v29 }
 0x14f   :  { %v1721_v38 = vpop.eup %1720  ;;  %1726 = vtanh.f32 %v993_v30  ;;  %v1442_v40 = vadd.f32 %v1441_v19, %v1440_v31  ;;  %v1506_v41 = vadd.f32 %v1505_v33, %v1504_v32  ;;  %v1443_v44 = vpop.f32.mrb[46].mxu1 }
 0x150   :  { %v1507_v62 = vpop.f32.mrb[46].mxu0  ;;  %v1444_v45 = vpop.f32.mrb[47].mxu1  ;;  %1093 = vst.msk [vmem:[%s2385_s3 + $0x40] sm:$0xff] %vm1084_vm5, %v1076_v34  ;;  %v1125_v46 = vmul.f32 %v1109_v35, %v2141_v60  ;;  %v1077_v47 = vmul.f32 %v1535_v49, %v2136_v53  ;;  %v1110_v50 = vadd.f32 %v1535_v49, %v2132_v52  ;;  %v1030_v13 = vmul.f32 %v1721_v38, %v2105_v14 }
 0x151   :  { %v1508_v36 = vpop.f32.mrb[47].mxu0  ;;  %v1723_v55 = vpop.eup %1722  ;;  %v901_v51 = vadd.f32 %v1442_v40, %v804_v39  ;;  %v1445_v4 = vadd.f32 %v1444_v45, %v1443_v44 }
 0x152   :  { %v1509_v56 = vadd.f32 %v1508_v36, %v1507_v62  ;;  %v1157_v57 = vsel %vm1084_vm5, %v1125_v46, 0.0  ;;  %1094 = vst.msk [vmem:[%s2385_s3 + $0x48] sm:$0xff] %vm1084_vm5, %v1077_v47  ;;  %v1126_v58 = vmul.f32 %v1110_v50, %v2141_v60  ;;  %v1046_v59 = vsub.f32 %v1030_v13, %v2113_v26 }
 0x153   :  { %v1031_v37 = vmul.f32 %v1723_v55, %v2105_v14  ;;  %v998_v0 = vadd.f32 %v1506_v41, %v901_v51  ;;  %v904_v1 = vadd.f32 %v1445_v4, %v807_v42  ;;  %1158 = vadd.xlane.f32.xlu0 %v1157_v57 }
 0x154   :  { %v1160_v20 = vsel %vm1084_vm5, %v1126_v58, 0.0  ;;  %v1536_v21 = vround.rtne.f32 %v1046_v59 }
 0x155   :  { %v1047_v2 = vsub.f32 %v1031_v37, %v2113_v26  ;;  %1728 = vtanh.f32 %v998_v0  ;;  %v1001_v3 = vadd.f32 %v1509_v56, %v904_v1  ;;  %1161 = vadd.xlane.f32.xlu1 %v1160_v20 }
 0x156   :  { %v1078_v6 = vmul.f32 %v1536_v21, %v2136_v53  ;;  %v1111_v48 = vadd.f32 %v1536_v21, %v2132_v52 }
 0x157   :  { %v1537_v7 = vround.rtne.f32 %v1047_v2  ;;  %v1725_v8 = vpop.eup %1724  ;;  %1730 = vtanh.f32 %v1001_v3 }
 0x158   :  { %1095 = vst.msk [vmem:[%s2385_s3 + $0x50] sm:$0xff] %vm1084_vm5, %v1078_v6  ;;  %v1127_v9 = vmul.f32 %v1111_v48, %v2141_v60  ;;  %v1032_v43 = vmul.f32 %v1725_v8, %v2105_v14 }
 0x159   :  { %v1079_v10 = vmul.f32 %v1537_v7, %v2136_v53  ;;  %v1112_v11 = vadd.f32 %v1537_v7, %v2132_v52  ;;  %v1727_v61 = vpop.eup %1726 }
 0x15a   :  { %v1163_v63 = vsel %vm1084_vm5, %v1127_v9, 0.0  ;;  %v1048_v16 = vsub.f32 %v1032_v43, %v2113_v26  ;;  %v1033_v17 = vmul.f32 %v1727_v61, %v2105_v14 }
 0x15b   :  { %1096 = vst.msk [vmem:[%s2385_s3 + $0x58] sm:$0xff] %vm1084_vm5, %v1079_v10  ;;  %v1128_v15 = vmul.f32 %v1112_v11, %v2141_v60  ;;  %1164 = vadd.xlane.f32.xlu0 %v1163_v63 }
 0x15c   :  { %v1538_v12 = vround.rtne.f32 %v1048_v16  ;;  %v1049_v54 = vsub.f32 %v1033_v17, %v2113_v26 }
 0x15d   :  { %v1166_v18 = vsel %vm1084_vm5, %v1128_v15, 0.0 }
 0x15e   :  { %1167 = vadd.xlane.f32.xlu1 %v1166_v18  ;;  %v1080_v22 = vmul.f32 %v1538_v12, %v2136_v53  ;;  %v1113_v23 = vadd.f32 %v1538_v12, %v2132_v52  ;;  %v1539_v24 = vround.rtne.f32 %v1049_v54 }
 0x15f   :  { %v1729_v25 = vpop.eup %1728 }
 0x160   :  { %1097 = vst.msk [vmem:[%s2385_s3 + $0x60] sm:$0xff] %vm1084_vm5, %v1080_v22  ;;  %v1129_v27 = vmul.f32 %v1113_v23, %v2141_v60  ;;  %v1081_v5 = vmul.f32 %v1539_v24, %v2136_v53  ;;  %v1114_v28 = vadd.f32 %v1539_v24, %v2132_v52  ;;  %v1034_v29 = vmul.f32 %v1729_v25, %v2105_v14 }
 0x161   :  { %v1731_v30 = vpop.eup %1730 }
 0x162   :  { %v1169_v31 = vsel %vm1084_vm5, %v1129_v27, 0.0  ;;  %1098 = vst.msk [vmem:[%s2385_s3 + $0x68] sm:$0xff] %vm1084_vm5, %v1081_v5  ;;  %v1130_v32 = vmul.f32 %v1114_v28, %v2141_v60  ;;  %v1050_v19 = vsub.f32 %v1034_v29, %v2113_v26  ;;  %v1035_v33 = vmul.f32 %v1731_v30, %v2105_v14 }
 0x163   :  { %1170 = vadd.xlane.f32.xlu0 %v1169_v31 }
 0x164   :  { %v1172_v34 = vsel %vm1084_vm5, %v1130_v32, 0.0  ;;  %v1540_v35 = vround.rtne.f32 %v1050_v19  ;;  %v1051_v49 = vsub.f32 %v1035_v33, %v2113_v26 }
 0x165   :  { %1173 = vadd.xlane.f32.xlu1 %v1172_v34 }
 0x166   :  { %v1082_v38 = vmul.f32 %v1540_v35, %v2136_v53  ;;  %v1115_v39 = vadd.f32 %v1540_v35, %v2132_v52  ;;  %v1541_v40 = vround.rtne.f32 %v1051_v49 }
 0x168   :  { %1099 = vst.msk [vmem:[%s2385_s3 + $0x70] sm:$0xff] %vm1084_vm5, %v1082_v38  ;;  %v1131_v41 = vmul.f32 %v1115_v39, %v2141_v60  ;;  %v1083_v14 = vmul.f32 %v1541_v40, %v2136_v53  ;;  %v1116_v44 = vadd.f32 %v1541_v40, %v2132_v52 }
 0x16a   :  { %v1175_v62 = vsel %vm1084_vm5, %v1131_v41, 0.0  ;;  %1100 = vst.msk [vmem:[%s2385_s3 + $0x78] sm:$0xff] %vm1084_vm5, %v1083_v14  ;;  %v1132_v26 = vmul.f32 %v1116_v44, %v2141_v60 }
 0x16b   :  { %1176 = vadd.xlane.f32.xlu0 %v1175_v62 }
 0x16c   :  { %v1178_v45 = vsel %vm1084_vm5, %v1132_v26, 0.0 }
 0x16d   :  { %1179 = vadd.xlane.f32.xlu1 %v1178_v45 }
 0x1c0   :  { %v1135_v36 = vpop.xlane.xlu0 %1134 }
 0x1c1   :  { %v1542_v46 = vtrunc.f32 %v1135_v36 }
 0x1c3   :  { %v1543_v47 = vcvt.f32.s32 %v1542_v46 }
 0x1c4   :  { %v1138_v53 = vpop.xlane.xlu0 %1137 }
 0x1c5   :  { %1198 = vst.msk [vmem:[%s2386_s2] sm:$0xff] %vm1197_vm6, %v1543_v47  ;;  %v1544_v52 = vtrunc.f32 %v1138_v53 }
 0x1c7   :  { %v1545_v50 = vcvt.f32.s32 %v1544_v52 }
 0x1c8   :  { %v1141_v13 = vpop.xlane.xlu1 %1140 }
 0x1c9   :  { %1199 = vst.msk [vmem:[%s2386_s2 + $0x8] sm:$0xff] %vm1197_vm6, %v1545_v50  ;;  %v1546_v60 = vtrunc.f32 %v1141_v13 }
 0x1cb   :  { %v1547_v55 = vcvt.f32.s32 %v1546_v60 }
 0x1cc   :  { %v1144_v42 = vpop.xlane.xlu1 %1143 }
 0x1cd   :  { %1200 = vst.msk [vmem:[%s2386_s2 + $0x10] sm:$0xff] %vm1197_vm6, %v1547_v55  ;;  %v1548_v51 = vtrunc.f32 %v1144_v42 }
 0x1cf   :  { %v1549_v4 = vcvt.f32.s32 %v1548_v51 }
 0x1d0   :  { %v1147_v56 = vpop.xlane.xlu0 %1146 }
 0x1d1   :  { %1201 = vst.msk [vmem:[%s2386_s2 + $0x18] sm:$0xff] %vm1197_vm6, %v1549_v4  ;;  %v1550_v57 = vtrunc.f32 %v1147_v56 }
 0x1d2   :  { %v1150_v58 = vpop.xlane.xlu1 %1149 }
 0x1d3   :  { %v1551_v59 = vcvt.f32.s32 %v1550_v57  ;;  %v1552_v37 = vtrunc.f32 %v1150_v58 }
 0x1d5   :  { %1202 = vst.msk [vmem:[%s2386_s2 + $0x20] sm:$0xff] %vm1197_vm6, %v1551_v59  ;;  %v1553_v0 = vcvt.f32.s32 %v1552_v37 }
 0x1d7   :  { %1203 = vst.msk [vmem:[%s2386_s2 + $0x28] sm:$0xff] %vm1197_vm6, %v1553_v0 }
 0x1d8   :  { %v1153_v1 = vpop.xlane.xlu0 %1152 }
 0x1d9   :  { %v1554_v20 = vtrunc.f32 %v1153_v1 }
 0x1db   :  { %v1156_v21 = vpop.xlane.xlu1 %1155  ;;  %v1555_v2 = vcvt.f32.s32 %v1554_v20 }
 0x1dc   :  { %v1556_v3 = vtrunc.f32 %v1156_v21 }
 0x1dd   :  { %1204 = vst.msk [vmem:[%s2386_s2 + $0x30] sm:$0xff] %vm1197_vm6, %v1555_v2 }
 0x1de   :  { %v1557_v6 = vcvt.f32.s32 %v1556_v3 }
 0x1e0   :  { %1205 = vst.msk [vmem:[%s2386_s2 + $0x38] sm:$0xff] %vm1197_vm6, %v1557_v6  ;;  %v1159_v48 = vpop.xlane.xlu0 %1158 }
 0x1e1   :  { %v1558_v7 = vtrunc.f32 %v1159_v48 }
 0x1e2   :  { %v1162_v8 = vpop.xlane.xlu1 %1161 }
 0x1e3   :  { %v1559_v9 = vcvt.f32.s32 %v1558_v7  ;;  %v1560_v10 = vtrunc.f32 %v1162_v8 }
 0x1e5   :  { %1206 = vst.msk [vmem:[%s2386_s2 + $0x40] sm:$0xff] %vm1197_vm6, %v1559_v9  ;;  %v1561_v11 = vcvt.f32.s32 %v1560_v10 }
 0x1e7   :  { %1207 = vst.msk [vmem:[%s2386_s2 + $0x48] sm:$0xff] %vm1197_vm6, %v1561_v11 }
 0x1e8   :  { %v1165_v43 = vpop.xlane.xlu0 %1164 }
 0x1e9   :  { %v1562_v61 = vtrunc.f32 %v1165_v43 }
 0x1eb   :  { %v1168_v63 = vpop.xlane.xlu1 %1167  ;;  %v1563_v15 = vcvt.f32.s32 %v1562_v61 }
 0x1ec   :  { %v1564_v16 = vtrunc.f32 %v1168_v63 }
 0x1ed   :  { %1208 = vst.msk [vmem:[%s2386_s2 + $0x50] sm:$0xff] %vm1197_vm6, %v1563_v15 }
 0x1ee   :  { %v1565_v17 = vcvt.f32.s32 %v1564_v16 }
 0x1f0   :  { %1209 = vst.msk [vmem:[%s2386_s2 + $0x58] sm:$0xff] %vm1197_vm6, %v1565_v17  ;;  %v1171_v18 = vpop.xlane.xlu0 %1170 }
 0x1f1   :  { %v1566_v12 = vtrunc.f32 %v1171_v18 }
 0x1f2   :  { %v1174_v54 = vpop.xlane.xlu1 %1173 }
 0x1f3   :  { %v1567_v22 = vcvt.f32.s32 %v1566_v12  ;;  %v1568_v23 = vtrunc.f32 %v1174_v54 }
 0x1f5   :  { %1210 = vst.msk [vmem:[%s2386_s2 + $0x60] sm:$0xff] %vm1197_vm6, %v1567_v22  ;;  %v1569_v24 = vcvt.f32.s32 %v1568_v23 }
 0x1f7   :  { %1211 = vst.msk [vmem:[%s2386_s2 + $0x68] sm:$0xff] %vm1197_vm6, %v1569_v24 }
 0x1f8   :  { %v1177_v25 = vpop.xlane.xlu0 %1176 }
 0x1f9   :  { %v1570_v27 = vtrunc.f32 %v1177_v25 }
 0x1fa   :  { %v1180_v5 = vpop.xlane.xlu1 %1179 }
 0x1fb   :  { %v1571_v28 = vcvt.f32.s32 %v1570_v27  ;;  %v1572_v29 = vtrunc.f32 %v1180_v5 }
 0x1fd   :  { %1212 = vst.msk [vmem:[%s2386_s2 + $0x70] sm:$0xff] %vm1197_vm6, %v1571_v28  ;;  %v1573_v30 = vcvt.f32.s32 %v1572_v29 }
 0x1ff   :  { %1213 = vst.msk [vmem:[%s2386_s2 + $0x78] sm:$0xff] %vm1197_vm6, %v1573_v30 }

</bundles_post_ra>
